<compile_context>
chip_gen: v6e
topology: v6e:2x2x1
jax: 0.10.0
libtpu: 0.0.40
codegen_flags: <defaults>
</compile_context>

<pallas_src>
import functools

import jax
import jax.numpy as jnp
from jax.experimental import pallas as pl
from jax.experimental.pallas import tpu as pltpu


# ----------------------------------------------------------------------------
# Fused two-layer conv kernel: one invocation processes the whole batch.
# ----------------------------------------------------------------------------
def _fused_conv_kernel(x_ref, w1_ref, b1_ref, w2_ref, b2_ref, o_ref, mid_ref,
                       *, KH, N, H1, H2):
    # x_ref  : (N, Hp, W*Cin)          row-padded input rows, lane dim = W*Cin
    # w1_ref : (KH, W*Cin,  W1*Cmid)   Toeplitz-lowered conv1 weights
    # b1_ref : (1, W1*Cmid)            conv1 bias tiled along lanes
    # w2_ref : (KH, W1*Cmid, W2*Cout)  Toeplitz-lowered conv2 weights
    # b2_ref : (1, W2*Cout)            conv2 bias tiled along lanes
    # o_ref  : (N, H2, W2*Cout)        output rows
    # mid_ref: VMEM (H1, W1*Cmid)      intermediate activation (never leaves VMEM)
    for n in range(N):                       # static unroll (N=2)
        # ---- layer 1: KH row-shifted matmuls (K=W*Cin, N=W1*Cmid) ----
        acc1 = jnp.zeros(mid_ref.shape, jnp.float32)
        for kh in range(KH):                 # static unroll (KH=5)
            acc1 = acc1 + jnp.dot(x_ref[n, kh:kh + H1, :], w1_ref[kh],
                                  preferred_element_type=jnp.float32)
        mid_ref[...] = acc1 + b1_ref[...]

        # ---- layer 2 ("valid"): K=W1*Cmid, N=W2*Cout ----
        acc2 = jnp.zeros((H2, o_ref.shape[2]), jnp.float32)
        for kh in range(KH):
            acc2 = acc2 + jnp.dot(mid_ref[kh:kh + H2, :], w2_ref[kh],
                                  preferred_element_type=jnp.float32)
        o_ref[n] = (acc2 + b2_ref[...]).astype(o_ref.dtype)


# ----------------------------------------------------------------------------
# Weight lowering: fold the kw taps (and the zero width-padding) of a 5x5
# HWIO kernel into KH banded matrices (w_in*Cin, w_out*Cout), so each kh-tap
# of the convolution is a single matmul over the width-and-channel lanes.
# ----------------------------------------------------------------------------
def _lowered_weights(w_hwio, w_in, w_out, pad):
    KH, KW, Cin, Cout = w_hwio.shape
    p = jnp.arange(w_in)                         # input column (unpadded)
    j = jnp.arange(w_out)                        # output column
    kw = jnp.arange(KW)
    # Output column j, tap kw reads input column j + kw - pad; out-of-range
    # columns are the zero padding and get no weight entry.
    diag = (p[None, :, None] == (j[None, None, :] + kw[:, None, None] - pad))
    diag = diag.astype(w_hwio.dtype)             # (KW, w_in, w_out)
    wt = jnp.einsum('kpj,hkcd->hpcjd', diag, w_hwio)  # (KH,w_in,Cin,w_out,Cout)
    return wt.reshape(KH, w_in * Cin, w_out * Cout)


@jax.jit
def conv2d_stack_forward(x_nchw, w1t, b1row, w2t, b2row):
    """Fused conv1(5x5, pad=2) -> conv2(5x5, valid). NCHW in, NCHW out."""
    N, Cin, H, W = x_nchw.shape
    KH = w1t.shape[0]
    pad = (KH - 1) // 2
    Hp = H + 2 * pad
    H1, W1 = H, W                                 # conv1 output ("same")
    H2, W2 = H1 - KH + 1, W1 - KH + 1             # conv2 output ("valid")
    WCin = W * Cin
    W1Cmid = w1t.shape[2]
    W2Cout = w2t.shape[2]
    Cout = W2Cout // W2

    # NCHW -> (N, Hp, W*Cin): channels-last rows + "same" row padding done
    # here (tiny, fuses with the transpose/reshape) instead of in-kernel.
    x_rows = jnp.transpose(x_nchw, (0, 2, 3, 1)).reshape(N, H, WCin)
    x_rows = jnp.pad(x_rows, ((0, 0), (pad, pad), (0, 0)))

    kernel = functools.partial(_fused_conv_kernel, KH=KH, N=N, H1=H1, H2=H2)

    out = pl.pallas_call(
        kernel,
        out_shape=jax.ShapeDtypeStruct((N, H2, W2Cout), jnp.float32),
        grid_spec=pltpu.PrefetchScalarGridSpec(
            num_scalar_prefetch=0,
            grid=(1,),                                   # single step
            in_specs=[
                pl.BlockSpec((N, Hp, WCin), lambda i: (0, 0, 0)),
                pl.BlockSpec((KH, WCin, W1Cmid), lambda i: (0, 0, 0)),
                pl.BlockSpec((1, W1Cmid), lambda i: (0, 0)),
                pl.BlockSpec((KH, W1Cmid, W2Cout), lambda i: (0, 0, 0)),
                pl.BlockSpec((1, W2Cout), lambda i: (0, 0)),
            ],
            out_specs=pl.BlockSpec((N, H2, W2Cout), lambda i: (0, 0, 0)),
            scratch_shapes=[
                pltpu.VMEM((H1, W1Cmid), jnp.float32),   # intermediate act
            ],
        ),
        compiler_params=pltpu.CompilerParams(
            dimension_semantics=("arbitrary",)),
    )(x_rows, w1t, b1row, w2t, b2row)

    # Tiny (4.6 KB) relayout back to torch's NCHW.
    return jnp.transpose(out.reshape(N, H2, W2, Cout), (0, 3, 1, 2))


# ----------------------------------------------------------------------------
# Parameter init (deterministic, mirrors the PyTorch module's init).
# ----------------------------------------------------------------------------
def xavier_uniform(key, KH, KW, cin, cout):
    fan_in = cin * KH * KW
    fan_out = cout * KH * KW
    bound = (6.0 / (fan_in + fan_out)) ** 0.5
    return jax.random.uniform(
        key, (KH, KW, cin, cout), jnp.float32, minval=-bound, maxval=bound)


def conv_bias(key, KH, KW, cin, cout):
    bound = 1.0 / (cin * KH * KW) ** 0.5      # PyTorch Conv2d default bias init
    return jax.random.uniform(key, (cout,), jnp.float32, minval=-bound, maxval=bound)


class Conv2DTestingPallas:
    """Mirror of the PyTorch Conv2DTesting module (forward only)."""
    # TODO(synk): the torch forward()'s print('conv1'/'conv2', shape) debug
    # statements are omitted (would be host-side prints / pl.debug_print).

    def __init__(self, input_channels, mid_channels, output_channels, key):
        k1, k2, k3, k4 = jax.random.split(key, 4)
        self.w1 = xavier_uniform(k1, 5, 5, input_channels, mid_channels)
        self.b1 = conv_bias(k2, 5, 5, input_channels, mid_channels)
        self.w2 = xavier_uniform(k3, 5, 5, mid_channels, output_channels)
        self.b2 = conv_bias(k4, 5, 5, mid_channels, output_channels)
        self._lowered_cache = {}          # per spatial width

    def _lowered(self, W):
        # The Toeplitz lowering depends on the spatial width, so build it
        # lazily once per width and cache it — it never runs in the jitted
        # per-call path again.
        if W not in self._lowered_cache:
            KH, KW, _, Cmid = self.w1.shape
            Cout = self.w2.shape[3]
            pad = (KW - 1) // 2
            W1 = W
            W2 = W1 - KW + 1
            w1t = _lowered_weights(self.w1, W, W1, pad)   # (KH, W*Cin,   W1*Cmid)
            w2t = _lowered_weights(self.w2, W1, W2, 0)    # (KH, W1*Cmid, W2*Cout)
            b1row = jnp.tile(self.b1, W1).reshape(1, W1 * Cmid)
            b2row = jnp.tile(self.b2, W2).reshape(1, W2 * Cout)
            self._lowered_cache[W] = tuple(
                jax.block_until_ready(a) for a in (w1t, b1row, w2t, b2row))
        return self._lowered_cache[W]

    def __call__(self, x_nchw):
        w1t, b1row, w2t, b2row = self._lowered(x_nchw.shape[-1])
        return conv2d_stack_forward(x_nchw, w1t, b1row, w2t, b2row)


# Pure-JAX reference for verification.
def _ref_forward(x_nchw, w1, b1, w2, b2):
    x = jnp.transpose(x_nchw, (0, 2, 3, 1))
    dn = ("NHWC", "HWIO", "NHWC")
    x = jax.lax.conv_general_dilated(x, w1, (1, 1), ((2, 2), (2, 2)),
                                     dimension_numbers=dn) + b1
    y = jax.lax.conv_general_dilated(x, w2, (1, 1), "VALID",
                                     dimension_numbers=dn) + b2
    return jnp.transpose(y, (0, 3, 1, 2))


if __name__ == "__main__":
    key = jax.random.PRNGKey(0)
    k_params, k_x = jax.random.split(key)

    N, CIN, CMID, COUT, H, W = 2, 4, 8, 4, 16, 16
    x = jax.random.normal(k_x, (N, CIN, H, W), jnp.float32)   # NCHW like torch

    model = Conv2DTestingPallas(CIN, CMID, COUT, k_params)

    out = jax.block_until_ready(model(x))
    assert out.shape == (N, COUT, H - 4, W - 4), out.shape

    ref = jax.block_until_ready(_ref_forward(x, model.w1, model.b1,
                                             model.w2, model.b2))
    assert jnp.allclose(out, ref, atol=1e-4, rtol=1e-4), "mismatch vs lax.conv"

    print("KERNEL_OK")
</pallas_src>

<mosaic_0001>
module attributes {stable_mosaic.version = 11 : i64} {
  func.func @_fused_conv_kernel(%arg0: i32, %arg1: memref<2x20x64xf32, #tpu.memory_space<vmem>>, %arg2: memref<5x64x128xf32, #tpu.memory_space<vmem>>, %arg3: memref<1x128xf32, #tpu.memory_space<vmem>>, %arg4: memref<5x128x48xf32, #tpu.memory_space<vmem>>, %arg5: memref<1x48xf32, #tpu.memory_space<vmem>>, %arg6: memref<2x12x48xf32, #tpu.memory_space<vmem>>, %arg7: memref<16x128xf32, #tpu.memory_space<vmem>>) attributes {dimension_semantics = [#tpu.dimension_semantics<arbitrary>], iteration_bounds = array<i64: 1>, scalar_prefetch = 0 : i64, scratch_operands = 1 : i64, tpu.core_type = #tpu.core_type<tc>, window_params = [{pipeline_mode = #tpu.pipeline_mode<synchronous>, transform_indices = @transform_0, window_bounds = array<i64: 2, 20, 64>}, {pipeline_mode = #tpu.pipeline_mode<synchronous>, transform_indices = @transform_1, window_bounds = array<i64: 5, 64, 128>}, {pipeline_mode = #tpu.pipeline_mode<synchronous>, transform_indices = @transform_2, window_bounds = array<i64: 1, 128>}, {pipeline_mode = #tpu.pipeline_mode<synchronous>, transform_indices = @transform_3, window_bounds = array<i64: 5, 128, 48>}, {pipeline_mode = #tpu.pipeline_mode<synchronous>, transform_indices = @transform_4, window_bounds = array<i64: 1, 48>}, {pipeline_mode = #tpu.pipeline_mode<synchronous>, transform_indices = @transform_5, window_bounds = array<i64: 2, 12, 48>}]} {
    %cst = arith.constant 0.000000e+00 : f32
    %0 = vector.broadcast %cst : f32 to vector<16x128xf32>
    %c0 = arith.constant 0 : index
    %c0_0 = arith.constant 0 : index
    %c0_1 = arith.constant 0 : index
    %1 = vector.load %arg1[%c0, %c0_0, %c0_1] : memref<2x20x64xf32, #tpu.memory_space<vmem>>, vector<1x16x64xf32>
    %2 = vector.shape_cast %1 : vector<1x16x64xf32> to vector<16x64xf32>
    %c0_2 = arith.constant 0 : index
    %c0_3 = arith.constant 0 : index
    %c0_4 = arith.constant 0 : index
    %3 = vector.load %arg2[%c0_2, %c0_3, %c0_4] : memref<5x64x128xf32, #tpu.memory_space<vmem>>, vector<1x64x128xf32>
    %4 = vector.shape_cast %3 : vector<1x64x128xf32> to vector<64x128xf32>
    %cst_5 = arith.constant dense<0.000000e+00> : vector<16x128xf32>
    %5 = tpu.matmul %2, %4, %cst_5 {dimension_numbers = #tpu.dot_dimension_numbers<[1], [0], [0], [1], [0, 0, 1, 1], [], []>} : vector<16x64xf32>, vector<64x128xf32>, vector<16x128xf32> -> vector<16x128xf32>
    %6 = arith.addf %0, %5 : vector<16x128xf32>
    %c0_6 = arith.constant 0 : index
    %c1 = arith.constant 1 : index
    %c0_7 = arith.constant 0 : index
    %7 = vector.load %arg1[%c0_6, %c1, %c0_7] : memref<2x20x64xf32, #tpu.memory_space<vmem>>, vector<1x16x64xf32>
    %8 = vector.shape_cast %7 : vector<1x16x64xf32> to vector<16x64xf32>
    %c1_8 = arith.constant 1 : index
    %c0_9 = arith.constant 0 : index
    %c0_10 = arith.constant 0 : index
    %9 = vector.load %arg2[%c1_8, %c0_9, %c0_10] : memref<5x64x128xf32, #tpu.memory_space<vmem>>, vector<1x64x128xf32>
    %10 = vector.shape_cast %9 : vector<1x64x128xf32> to vector<64x128xf32>
    %cst_11 = arith.constant dense<0.000000e+00> : vector<16x128xf32>
    %11 = tpu.matmul %8, %10, %cst_11 {dimension_numbers = #tpu.dot_dimension_numbers<[1], [0], [0], [1], [0, 0, 1, 1], [], []>} : vector<16x64xf32>, vector<64x128xf32>, vector<16x128xf32> -> vector<16x128xf32>
    %12 = arith.addf %6, %11 : vector<16x128xf32>
    %c0_12 = arith.constant 0 : index
    %c2 = arith.constant 2 : index
    %c0_13 = arith.constant 0 : index
    %13 = vector.load %arg1[%c0_12, %c2, %c0_13] : memref<2x20x64xf32, #tpu.memory_space<vmem>>, vector<1x16x64xf32>
    %14 = vector.shape_cast %13 : vector<1x16x64xf32> to vector<16x64xf32>
    %c2_14 = arith.constant 2 : index
    %c0_15 = arith.constant 0 : index
    %c0_16 = arith.constant 0 : index
    %15 = vector.load %arg2[%c2_14, %c0_15, %c0_16] : memref<5x64x128xf32, #tpu.memory_space<vmem>>, vector<1x64x128xf32>
    %16 = vector.shape_cast %15 : vector<1x64x128xf32> to vector<64x128xf32>
    %cst_17 = arith.constant dense<0.000000e+00> : vector<16x128xf32>
    %17 = tpu.matmul %14, %16, %cst_17 {dimension_numbers = #tpu.dot_dimension_numbers<[1], [0], [0], [1], [0, 0, 1, 1], [], []>} : vector<16x64xf32>, vector<64x128xf32>, vector<16x128xf32> -> vector<16x128xf32>
    %18 = arith.addf %12, %17 : vector<16x128xf32>
    %c0_18 = arith.constant 0 : index
    %c3 = arith.constant 3 : index
    %c0_19 = arith.constant 0 : index
    %19 = vector.load %arg1[%c0_18, %c3, %c0_19] : memref<2x20x64xf32, #tpu.memory_space<vmem>>, vector<1x16x64xf32>
    %20 = vector.shape_cast %19 : vector<1x16x64xf32> to vector<16x64xf32>
    %c3_20 = arith.constant 3 : index
    %c0_21 = arith.constant 0 : index
    %c0_22 = arith.constant 0 : index
    %21 = vector.load %arg2[%c3_20, %c0_21, %c0_22] : memref<5x64x128xf32, #tpu.memory_space<vmem>>, vector<1x64x128xf32>
    %22 = vector.shape_cast %21 : vector<1x64x128xf32> to vector<64x128xf32>
    %cst_23 = arith.constant dense<0.000000e+00> : vector<16x128xf32>
    %23 = tpu.matmul %20, %22, %cst_23 {dimension_numbers = #tpu.dot_dimension_numbers<[1], [0], [0], [1], [0, 0, 1, 1], [], []>} : vector<16x64xf32>, vector<64x128xf32>, vector<16x128xf32> -> vector<16x128xf32>
    %24 = arith.addf %18, %23 : vector<16x128xf32>
    %c0_24 = arith.constant 0 : index
    %c4 = arith.constant 4 : index
    %c0_25 = arith.constant 0 : index
    %25 = vector.load %arg1[%c0_24, %c4, %c0_25] : memref<2x20x64xf32, #tpu.memory_space<vmem>>, vector<1x16x64xf32>
    %26 = vector.shape_cast %25 : vector<1x16x64xf32> to vector<16x64xf32>
    %c4_26 = arith.constant 4 : index
    %c0_27 = arith.constant 0 : index
    %c0_28 = arith.constant 0 : index
    %27 = vector.load %arg2[%c4_26, %c0_27, %c0_28] : memref<5x64x128xf32, #tpu.memory_space<vmem>>, vector<1x64x128xf32>
    %28 = vector.shape_cast %27 : vector<1x64x128xf32> to vector<64x128xf32>
    %cst_29 = arith.constant dense<0.000000e+00> : vector<16x128xf32>
    %29 = tpu.matmul %26, %28, %cst_29 {dimension_numbers = #tpu.dot_dimension_numbers<[1], [0], [0], [1], [0, 0, 1, 1], [], []>} : vector<16x64xf32>, vector<64x128xf32>, vector<16x128xf32> -> vector<16x128xf32>
    %30 = arith.addf %24, %29 : vector<16x128xf32>
    %c0_30 = arith.constant 0 : index
    %c0_31 = arith.constant 0 : index
    %31 = vector.load %arg3[%c0_30, %c0_31] : memref<1x128xf32, #tpu.memory_space<vmem>>, vector<1x128xf32>
    %32 = vector.broadcast %31 : vector<1x128xf32> to vector<16x128xf32>
    %33 = arith.addf %30, %32 : vector<16x128xf32>
    %c0_32 = arith.constant 0 : index
    %c0_33 = arith.constant 0 : index
    %34 = vector.load %arg7[%c0_32, %c0_33] : memref<16x128xf32, #tpu.memory_space<vmem>>, vector<16x128xf32>
    tpu.vector_store %arg7[%c0_32, %c0_33], %33 {strides = array<i32>} : memref<16x128xf32, #tpu.memory_space<vmem>>, vector<16x128xf32>,
    %cst_34 = arith.constant 0.000000e+00 : f32
    %35 = vector.broadcast %cst_34 : f32 to vector<12x48xf32>
    %c0_35 = arith.constant 0 : index
    %c0_36 = arith.constant 0 : index
    %36 = vector.load %arg7[%c0_35, %c0_36] : memref<16x128xf32, #tpu.memory_space<vmem>>, vector<12x128xf32>
    %c0_37 = arith.constant 0 : index
    %c0_38 = arith.constant 0 : index
    %c0_39 = arith.constant 0 : index
    %37 = vector.load %arg4[%c0_37, %c0_38, %c0_39] : memref<5x128x48xf32, #tpu.memory_space<vmem>>, vector<1x128x48xf32>
    %38 = vector.shape_cast %37 : vector<1x128x48xf32> to vector<128x48xf32>
    %cst_40 = arith.constant dense<0.000000e+00> : vector<12x48xf32>
    %39 = tpu.matmul %36, %38, %cst_40 {dimension_numbers = #tpu.dot_dimension_numbers<[1], [0], [0], [1], [0, 0, 1, 1], [], []>} : vector<12x128xf32>, vector<128x48xf32>, vector<12x48xf32> -> vector<12x48xf32>
    %40 = arith.addf %35, %39 : vector<12x48xf32>
    %c1_41 = arith.constant 1 : index
    %c0_42 = arith.constant 0 : index
    %41 = vector.load %arg7[%c1_41, %c0_42] : memref<16x128xf32, #tpu.memory_space<vmem>>, vector<12x128xf32>
    %c1_43 = arith.constant 1 : index
    %c0_44 = arith.constant 0 : index
    %c0_45 = arith.constant 0 : index
    %42 = vector.load %arg4[%c1_43, %c0_44, %c0_45] : memref<5x128x48xf32, #tpu.memory_space<vmem>>, vector<1x128x48xf32>
    %43 = vector.shape_cast %42 : vector<1x128x48xf32> to vector<128x48xf32>
    %cst_46 = arith.constant dense<0.000000e+00> : vector<12x48xf32>
    %44 = tpu.matmul %41, %43, %cst_46 {dimension_numbers = #tpu.dot_dimension_numbers<[1], [0], [0], [1], [0, 0, 1, 1], [], []>} : vector<12x128xf32>, vector<128x48xf32>, vector<12x48xf32> -> vector<12x48xf32>
    %45 = arith.addf %40, %44 : vector<12x48xf32>
    %c2_47 = arith.constant 2 : index
    %c0_48 = arith.constant 0 : index
    %46 = vector.load %arg7[%c2_47, %c0_48] : memref<16x128xf32, #tpu.memory_space<vmem>>, vector<12x128xf32>
    %c2_49 = arith.constant 2 : index
    %c0_50 = arith.constant 0 : index
    %c0_51 = arith.constant 0 : index
    %47 = vector.load %arg4[%c2_49, %c0_50, %c0_51] : memref<5x128x48xf32, #tpu.memory_space<vmem>>, vector<1x128x48xf32>
    %48 = vector.shape_cast %47 : vector<1x128x48xf32> to vector<128x48xf32>
    %cst_52 = arith.constant dense<0.000000e+00> : vector<12x48xf32>
    %49 = tpu.matmul %46, %48, %cst_52 {dimension_numbers = #tpu.dot_dimension_numbers<[1], [0], [0], [1], [0, 0, 1, 1], [], []>} : vector<12x128xf32>, vector<128x48xf32>, vector<12x48xf32> -> vector<12x48xf32>
    %50 = arith.addf %45, %49 : vector<12x48xf32>
    %c3_53 = arith.constant 3 : index
    %c0_54 = arith.constant 0 : index
    %51 = vector.load %arg7[%c3_53, %c0_54] : memref<16x128xf32, #tpu.memory_space<vmem>>, vector<12x128xf32>
    %c3_55 = arith.constant 3 : index
    %c0_56 = arith.constant 0 : index
    %c0_57 = arith.constant 0 : index
    %52 = vector.load %arg4[%c3_55, %c0_56, %c0_57] : memref<5x128x48xf32, #tpu.memory_space<vmem>>, vector<1x128x48xf32>
    %53 = vector.shape_cast %52 : vector<1x128x48xf32> to vector<128x48xf32>
    %cst_58 = arith.constant dense<0.000000e+00> : vector<12x48xf32>
    %54 = tpu.matmul %51, %53, %cst_58 {dimension_numbers = #tpu.dot_dimension_numbers<[1], [0], [0], [1], [0, 0, 1, 1], [], []>} : vector<12x128xf32>, vector<128x48xf32>, vector<12x48xf32> -> vector<12x48xf32>
    %55 = arith.addf %50, %54 : vector<12x48xf32>
    %c4_59 = arith.constant 4 : index
    %c0_60 = arith.constant 0 : index
    %56 = vector.load %arg7[%c4_59, %c0_60] : memref<16x128xf32, #tpu.memory_space<vmem>>, vector<12x128xf32>
    %c4_61 = arith.constant 4 : index
    %c0_62 = arith.constant 0 : index
    %c0_63 = arith.constant 0 : index
    %57 = vector.load %arg4[%c4_61, %c0_62, %c0_63] : memref<5x128x48xf32, #tpu.memory_space<vmem>>, vector<1x128x48xf32>
    %58 = vector.shape_cast %57 : vector<1x128x48xf32> to vector<128x48xf32>
    %cst_64 = arith.constant dense<0.000000e+00> : vector<12x48xf32>
    %59 = tpu.matmul %56, %58, %cst_64 {dimension_numbers = #tpu.dot_dimension_numbers<[1], [0], [0], [1], [0, 0, 1, 1], [], []>} : vector<12x128xf32>, vector<128x48xf32>, vector<12x48xf32> -> vector<12x48xf32>
    %60 = arith.addf %55, %59 : vector<12x48xf32>
    %c0_65 = arith.constant 0 : index
    %c0_66 = arith.constant 0 : index
    %61 = vector.load %arg5[%c0_65, %c0_66] : memref<1x48xf32, #tpu.memory_space<vmem>>, vector<1x48xf32>
    %62 = vector.broadcast %61 : vector<1x48xf32> to vector<12x48xf32>
    %63 = arith.addf %60, %62 : vector<12x48xf32>
    %c0_67 = arith.constant 0 : index
    %c0_68 = arith.constant 0 : index
    %c0_69 = arith.constant 0 : index
    %64 = vector.load %arg6[%c0_67, %c0_68, %c0_69] : memref<2x12x48xf32, #tpu.memory_space<vmem>>, vector<1x12x48xf32>
    %65 = vector.shape_cast %64 : vector<1x12x48xf32> to vector<12x48xf32>
    %66 = vector.shape_cast %63 : vector<12x48xf32> to vector<1x12x48xf32>
    tpu.vector_store %arg6[%c0_67, %c0_68, %c0_69], %66 {strides = array<i32>} : memref<2x12x48xf32, #tpu.memory_space<vmem>>, vector<1x12x48xf32>,
    %cst_70 = arith.constant 0.000000e+00 : f32
    %67 = vector.broadcast %cst_70 : f32 to vector<16x128xf32>
    %c1_71 = arith.constant 1 : index
    %c0_72 = arith.constant 0 : index
    %c0_73 = arith.constant 0 : index
    %68 = vector.load %arg1[%c1_71, %c0_72, %c0_73] : memref<2x20x64xf32, #tpu.memory_space<vmem>>, vector<1x16x64xf32>
    %69 = vector.shape_cast %68 : vector<1x16x64xf32> to vector<16x64xf32>
    %c0_74 = arith.constant 0 : index
    %c0_75 = arith.constant 0 : index
    %c0_76 = arith.constant 0 : index
    %70 = vector.load %arg2[%c0_74, %c0_75, %c0_76] : memref<5x64x128xf32, #tpu.memory_space<vmem>>, vector<1x64x128xf32>
    %71 = vector.shape_cast %70 : vector<1x64x128xf32> to vector<64x128xf32>
    %cst_77 = arith.constant dense<0.000000e+00> : vector<16x128xf32>
    %72 = tpu.matmul %69, %71, %cst_77 {dimension_numbers = #tpu.dot_dimension_numbers<[1], [0], [0], [1], [0, 0, 1, 1], [], []>} : vector<16x64xf32>, vector<64x128xf32>, vector<16x128xf32> -> vector<16x128xf32>
    %73 = arith.addf %67, %72 : vector<16x128xf32>
    %c1_78 = arith.constant 1 : index
    %c1_79 = arith.constant 1 : index
    %c0_80 = arith.constant 0 : index
    %74 = vector.load %arg1[%c1_78, %c1_79, %c0_80] : memref<2x20x64xf32, #tpu.memory_space<vmem>>, vector<1x16x64xf32>
    %75 = vector.shape_cast %74 : vector<1x16x64xf32> to vector<16x64xf32>
    %c1_81 = arith.constant 1 : index
    %c0_82 = arith.constant 0 : index
    %c0_83 = arith.constant 0 : index
    %76 = vector.load %arg2[%c1_81, %c0_82, %c0_83] : memref<5x64x128xf32, #tpu.memory_space<vmem>>, vector<1x64x128xf32>
    %77 = vector.shape_cast %76 : vector<1x64x128xf32> to vector<64x128xf32>
    %cst_84 = arith.constant dense<0.000000e+00> : vector<16x128xf32>
    %78 = tpu.matmul %75, %77, %cst_84 {dimension_numbers = #tpu.dot_dimension_numbers<[1], [0], [0], [1], [0, 0, 1, 1], [], []>} : vector<16x64xf32>, vector<64x128xf32>, vector<16x128xf32> -> vector<16x128xf32>
    %79 = arith.addf %73, %78 : vector<16x128xf32>
    %c1_85 = arith.constant 1 : index
    %c2_86 = arith.constant 2 : index
    %c0_87 = arith.constant 0 : index
    %80 = vector.load %arg1[%c1_85, %c2_86, %c0_87] : memref<2x20x64xf32, #tpu.memory_space<vmem>>, vector<1x16x64xf32>
    %81 = vector.shape_cast %80 : vector<1x16x64xf32> to vector<16x64xf32>
    %c2_88 = arith.constant 2 : index
    %c0_89 = arith.constant 0 : index
    %c0_90 = arith.constant 0 : index
    %82 = vector.load %arg2[%c2_88, %c0_89, %c0_90] : memref<5x64x128xf32, #tpu.memory_space<vmem>>, vector<1x64x128xf32>
    %83 = vector.shape_cast %82 : vector<1x64x128xf32> to vector<64x128xf32>
    %cst_91 = arith.constant dense<0.000000e+00> : vector<16x128xf32>
    %84 = tpu.matmul %81, %83, %cst_91 {dimension_numbers = #tpu.dot_dimension_numbers<[1], [0], [0], [1], [0, 0, 1, 1], [], []>} : vector<16x64xf32>, vector<64x128xf32>, vector<16x128xf32> -> vector<16x128xf32>
    %85 = arith.addf %79, %84 : vector<16x128xf32>
    %c1_92 = arith.constant 1 : index
    %c3_93 = arith.constant 3 : index
    %c0_94 = arith.constant 0 : index
    %86 = vector.load %arg1[%c1_92, %c3_93, %c0_94] : memref<2x20x64xf32, #tpu.memory_space<vmem>>, vector<1x16x64xf32>
    %87 = vector.shape_cast %86 : vector<1x16x64xf32> to vector<16x64xf32>
    %c3_95 = arith.constant 3 : index
    %c0_96 = arith.constant 0 : index
    %c0_97 = arith.constant 0 : index
    %88 = vector.load %arg2[%c3_95, %c0_96, %c0_97] : memref<5x64x128xf32, #tpu.memory_space<vmem>>, vector<1x64x128xf32>
    %89 = vector.shape_cast %88 : vector<1x64x128xf32> to vector<64x128xf32>
    %cst_98 = arith.constant dense<0.000000e+00> : vector<16x128xf32>
    %90 = tpu.matmul %87, %89, %cst_98 {dimension_numbers = #tpu.dot_dimension_numbers<[1], [0], [0], [1], [0, 0, 1, 1], [], []>} : vector<16x64xf32>, vector<64x128xf32>, vector<16x128xf32> -> vector<16x128xf32>
    %91 = arith.addf %85, %90 : vector<16x128xf32>
    %c1_99 = arith.constant 1 : index
    %c4_100 = arith.constant 4 : index
    %c0_101 = arith.constant 0 : index
    %92 = vector.load %arg1[%c1_99, %c4_100, %c0_101] : memref<2x20x64xf32, #tpu.memory_space<vmem>>, vector<1x16x64xf32>
    %93 = vector.shape_cast %92 : vector<1x16x64xf32> to vector<16x64xf32>
    %c4_102 = arith.constant 4 : index
    %c0_103 = arith.constant 0 : index
    %c0_104 = arith.constant 0 : index
    %94 = vector.load %arg2[%c4_102, %c0_103, %c0_104] : memref<5x64x128xf32, #tpu.memory_space<vmem>>, vector<1x64x128xf32>
    %95 = vector.shape_cast %94 : vector<1x64x128xf32> to vector<64x128xf32>
    %cst_105 = arith.constant dense<0.000000e+00> : vector<16x128xf32>
    %96 = tpu.matmul %93, %95, %cst_105 {dimension_numbers = #tpu.dot_dimension_numbers<[1], [0], [0], [1], [0, 0, 1, 1], [], []>} : vector<16x64xf32>, vector<64x128xf32>, vector<16x128xf32> -> vector<16x128xf32>
    %97 = arith.addf %91, %96 : vector<16x128xf32>
    %c0_106 = arith.constant 0 : index
    %c0_107 = arith.constant 0 : index
    %98 = vector.load %arg3[%c0_106, %c0_107] : memref<1x128xf32, #tpu.memory_space<vmem>>, vector<1x128xf32>
    %99 = vector.broadcast %98 : vector<1x128xf32> to vector<16x128xf32>
    %100 = arith.addf %97, %99 : vector<16x128xf32>
    %c0_108 = arith.constant 0 : index
    %c0_109 = arith.constant 0 : index
    %101 = vector.load %arg7[%c0_108, %c0_109] : memref<16x128xf32, #tpu.memory_space<vmem>>, vector<16x128xf32>
    tpu.vector_store %arg7[%c0_108, %c0_109], %100 {strides = array<i32>} : memref<16x128xf32, #tpu.memory_space<vmem>>, vector<16x128xf32>,
    %cst_110 = arith.constant 0.000000e+00 : f32
    %102 = vector.broadcast %cst_110 : f32 to vector<12x48xf32>
    %c0_111 = arith.constant 0 : index
    %c0_112 = arith.constant 0 : index
    %103 = vector.load %arg7[%c0_111, %c0_112] : memref<16x128xf32, #tpu.memory_space<vmem>>, vector<12x128xf32>
    %c0_113 = arith.constant 0 : index
    %c0_114 = arith.constant 0 : index
    %c0_115 = arith.constant 0 : index
    %104 = vector.load %arg4[%c0_113, %c0_114, %c0_115] : memref<5x128x48xf32, #tpu.memory_space<vmem>>, vector<1x128x48xf32>
    %105 = vector.shape_cast %104 : vector<1x128x48xf32> to vector<128x48xf32>
    %cst_116 = arith.constant dense<0.000000e+00> : vector<12x48xf32>
    %106 = tpu.matmul %103, %105, %cst_116 {dimension_numbers = #tpu.dot_dimension_numbers<[1], [0], [0], [1], [0, 0, 1, 1], [], []>} : vector<12x128xf32>, vector<128x48xf32>, vector<12x48xf32> -> vector<12x48xf32>
    %107 = arith.addf %102, %106 : vector<12x48xf32>
    %c1_117 = arith.constant 1 : index
    %c0_118 = arith.constant 0 : index
    %108 = vector.load %arg7[%c1_117, %c0_118] : memref<16x128xf32, #tpu.memory_space<vmem>>, vector<12x128xf32>
    %c1_119 = arith.constant 1 : index
    %c0_120 = arith.constant 0 : index
    %c0_121 = arith.constant 0 : index
    %109 = vector.load %arg4[%c1_119, %c0_120, %c0_121] : memref<5x128x48xf32, #tpu.memory_space<vmem>>, vector<1x128x48xf32>
    %110 = vector.shape_cast %109 : vector<1x128x48xf32> to vector<128x48xf32>
    %cst_122 = arith.constant dense<0.000000e+00> : vector<12x48xf32>
    %111 = tpu.matmul %108, %110, %cst_122 {dimension_numbers = #tpu.dot_dimension_numbers<[1], [0], [0], [1], [0, 0, 1, 1], [], []>} : vector<12x128xf32>, vector<128x48xf32>, vector<12x48xf32> -> vector<12x48xf32>
    %112 = arith.addf %107, %111 : vector<12x48xf32>
    %c2_123 = arith.constant 2 : index
    %c0_124 = arith.constant 0 : index
    %113 = vector.load %arg7[%c2_123, %c0_124] : memref<16x128xf32, #tpu.memory_space<vmem>>, vector<12x128xf32>
    %c2_125 = arith.constant 2 : index
    %c0_126 = arith.constant 0 : index
    %c0_127 = arith.constant 0 : index
    %114 = vector.load %arg4[%c2_125, %c0_126, %c0_127] : memref<5x128x48xf32, #tpu.memory_space<vmem>>, vector<1x128x48xf32>
    %115 = vector.shape_cast %114 : vector<1x128x48xf32> to vector<128x48xf32>
    %cst_128 = arith.constant dense<0.000000e+00> : vector<12x48xf32>
    %116 = tpu.matmul %113, %115, %cst_128 {dimension_numbers = #tpu.dot_dimension_numbers<[1], [0], [0], [1], [0, 0, 1, 1], [], []>} : vector<12x128xf32>, vector<128x48xf32>, vector<12x48xf32> -> vector<12x48xf32>
    %117 = arith.addf %112, %116 : vector<12x48xf32>
    %c3_129 = arith.constant 3 : index
    %c0_130 = arith.constant 0 : index
    %118 = vector.load %arg7[%c3_129, %c0_130] : memref<16x128xf32, #tpu.memory_space<vmem>>, vector<12x128xf32>
    %c3_131 = arith.constant 3 : index
    %c0_132 = arith.constant 0 : index
    %c0_133 = arith.constant 0 : index
    %119 = vector.load %arg4[%c3_131, %c0_132, %c0_133] : memref<5x128x48xf32, #tpu.memory_space<vmem>>, vector<1x128x48xf32>
    %120 = vector.shape_cast %119 : vector<1x128x48xf32> to vector<128x48xf32>
    %cst_134 = arith.constant dense<0.000000e+00> : vector<12x48xf32>
    %121 = tpu.matmul %118, %120, %cst_134 {dimension_numbers = #tpu.dot_dimension_numbers<[1], [0], [0], [1], [0, 0, 1, 1], [], []>} : vector<12x128xf32>, vector<128x48xf32>, vector<12x48xf32> -> vector<12x48xf32>
    %122 = arith.addf %117, %121 : vector<12x48xf32>
    %c4_135 = arith.constant 4 : index
    %c0_136 = arith.constant 0 : index
    %123 = vector.load %arg7[%c4_135, %c0_136] : memref<16x128xf32, #tpu.memory_space<vmem>>, vector<12x128xf32>
    %c4_137 = arith.constant 4 : index
    %c0_138 = arith.constant 0 : index
    %c0_139 = arith.constant 0 : index
    %124 = vector.load %arg4[%c4_137, %c0_138, %c0_139] : memref<5x128x48xf32, #tpu.memory_space<vmem>>, vector<1x128x48xf32>
    %125 = vector.shape_cast %124 : vector<1x128x48xf32> to vector<128x48xf32>
    %cst_140 = arith.constant dense<0.000000e+00> : vector<12x48xf32>
    %126 = tpu.matmul %123, %125, %cst_140 {dimension_numbers = #tpu.dot_dimension_numbers<[1], [0], [0], [1], [0, 0, 1, 1], [], []>} : vector<12x128xf32>, vector<128x48xf32>, vector<12x48xf32> -> vector<12x48xf32>
    %127 = arith.addf %122, %126 : vector<12x48xf32>
    %c0_141 = arith.constant 0 : index
    %c0_142 = arith.constant 0 : index
    %128 = vector.load %arg5[%c0_141, %c0_142] : memref<1x48xf32, #tpu.memory_space<vmem>>, vector<1x48xf32>
    %129 = vector.broadcast %128 : vector<1x48xf32> to vector<12x48xf32>
    %130 = arith.addf %127, %129 : vector<12x48xf32>
    %c1_143 = arith.constant 1 : index
    %c0_144 = arith.constant 0 : index
    %c0_145 = arith.constant 0 : index
    %131 = vector.load %arg6[%c1_143, %c0_144, %c0_145] : memref<2x12x48xf32, #tpu.memory_space<vmem>>, vector<1x12x48xf32>
    %132 = vector.shape_cast %131 : vector<1x12x48xf32> to vector<12x48xf32>
    %133 = vector.shape_cast %130 : vector<12x48xf32> to vector<1x12x48xf32>
    tpu.vector_store %arg6[%c1_143, %c0_144, %c0_145], %133 {strides = array<i32>} : memref<2x12x48xf32, #tpu.memory_space<vmem>>, vector<1x12x48xf32>,
    return
  }
  func.func @transform_0(%arg0: i32) -> (i32, i32, i32) {
    %c0_i32 = arith.constant 0 : i32
    %c0_i32_0 = arith.constant 0 : i32
    %c0_i32_1 = arith.constant 0 : i32
    %c0_i32_2 = arith.constant 0 : i32
    return %c0_i32, %c0_i32_0, %c0_i32_1 : i32, i32, i32
  }
  func.func @transform_1(%arg0: i32) -> (i32, i32, i32) {
    %c0_i32 = arith.constant 0 : i32
    %c0_i32_0 = arith.constant 0 : i32
    %c0_i32_1 = arith.constant 0 : i32
    %c0_i32_2 = arith.constant 0 : i32
    return %c0_i32, %c0_i32_0, %c0_i32_1 : i32, i32, i32
  }
  func.func @transform_2(%arg0: i32) -> (i32, i32) {
    %c0_i32 = arith.constant 0 : i32
    %c0_i32_0 = arith.constant 0 : i32
    %c0_i32_1 = arith.constant 0 : i32
    return %c0_i32, %c0_i32_0 : i32, i32
  }
  func.func @transform_3(%arg0: i32) -> (i32, i32, i32) {
    %c0_i32 = arith.constant 0 : i32
    %c0_i32_0 = arith.constant 0 : i32
    %c0_i32_1 = arith.constant 0 : i32
    %c0_i32_2 = arith.constant 0 : i32
    return %c0_i32, %c0_i32_0, %c0_i32_1 : i32, i32, i32
  }
  func.func @transform_4(%arg0: i32) -> (i32, i32) {
    %c0_i32 = arith.constant 0 : i32
    %c0_i32_0 = arith.constant 0 : i32
    %c0_i32_1 = arith.constant 0 : i32
    return %c0_i32, %c0_i32_0 : i32, i32
  }
  func.func @transform_5(%arg0: i32) -> (i32, i32, i32) {
    %c0_i32 = arith.constant 0 : i32
    %c0_i32_0 = arith.constant 0 : i32
    %c0_i32_1 = arith.constant 0 : i32
    %c0_i32_2 = arith.constant 0 : i32
    return %c0_i32, %c0_i32_0, %c0_i32_1 : i32, i32, i32
  }
}

</mosaic_0001>

<bundles_post_ra>
// kernel: conv2d_stack_forward.1
= control target key start
LH: loop header
LB: loop body
LE: loop exit
PB: predicated region body
PF: predicated region fallthrough
CT: control target
= control target key end

     0   :  { %vm41_vm0 = vcmask 523264   ;;  %vm983_vm1 = vcmask 388096   ;;  %vm981_vm2 = vcmask 392192   ;;  %s4217_s1 = inlined_call_operand.vmem [shape: f32[5,64,128], index: 1, kind: input, shape index: {}]   ;;  %s4218_s0 = inlined_call_operand.vmem [shape: f32[2,20,64], index: 0, kind: input, shape index: {}]   ;;  %s4219_s3 = inlined_call_operand.vmem [shape: f32[5,128,48], index: 3, kind: input, shape index: {}]   ;;  %s4220_s2 = inlined_call_operand.vmem [shape: f32[1,128], index: 2, kind: input, shape index: {}]   ;;  %s4221_s4 = inlined_call_operand.vmem [shape: f32[1,48], index: 4, kind: input, shape index: {}]   ;;  %s4222_s5 = inlined_call_operand.vmem [shape: f32[2,12,48], index: 5, kind: output, shape index: {}]  }
   0x1   :  { %v3026_v0 = vld [vmem:[%s4217_s1 + $0x78] sm:$0xff]  ;;  %v3031_v1 = vld [vmem:[%s4217_s1 + $0x70] sm:$0xff]  ;;  %v3038_v2 = vld [vmem:[%s4217_s1 + $0x68] sm:$0xff] }
   0x2   :  { %2453 = vmatprep.subr.mxu1 %v3026_v0  ;;  %v30_v3 = vld [vmem:[%s4218_s0 + $0x1] sm:$0xff]  ;;  %v3048_v4 = vld [vmem:[%s4217_s1 + $0xb8] sm:$0xff]  ;;  %v3060_v6 = vld [vmem:[%s4217_s1 + $0xb0] sm:$0xff] }
   0x3   :  { %2454 = vmatpush3.msra.mxu1 %v3026_v0  ;;  %2469 = vmatprep.mubr.msk.f32.mxu1 %vm41_vm0, %v30_v3  ;;  %v3054_v5 = vld [vmem:[%s4217_s1 + $0x60] sm:$0xff]  ;;  %v3067_v7 = vld [vmem:[%s4217_s1 + $0xa8] sm:$0xff]  ;;  %v3073_v8 = vld [vmem:[%s4217_s1 + $0x58] sm:$0xff] }
   0x4   :  { %2455 = vmatprep.subr.mxu1 %v3031_v1  ;;  %2491 = vmatprep.subr.mxu0 %v3048_v4  ;;  %v3081_v9 = vld [vmem:[%s4217_s1 + $0xa0] sm:$0xff]  ;;  %v3087_v10 = vld [vmem:[%s4217_s1 + $0x50] sm:$0xff]  ;;  %v3095_v11 = vld [vmem:[%s4217_s1 + $0x98] sm:$0xff] }
   0x5   :  { %2456 = vmatpush3.msra.mxu1 %v3031_v1  ;;  %2492 = vmatpush3.msra.mxu0 %v3048_v4  ;;  %v3101_v12 = vld [vmem:[%s4217_s1 + $0x48] sm:$0xff]  ;;  %v3109_v13 = vld [vmem:[%s4217_s1 + $0x90] sm:$0xff]  ;;  %v3115_v14 = vld [vmem:[%s4217_s1 + $0x40] sm:$0xff] }
   0x6   :  { %2457 = vmatprep.subr.mxu1 %v3038_v2  ;;  %2493 = vmatprep.subr.mxu0 %v3060_v6  ;;  %v3123_v15 = vld [vmem:[%s4217_s1 + $0x88] sm:$0xff]  ;;  %v3132_v17 = vld [vmem:[%s4217_s1 + $0x38] sm:$0xff]  ;;  %v3141_v18 = vld [vmem:[%s4217_s1 + $0x30] sm:$0xff] }
   0x7   :  { %2458 = vmatpush3.msra.mxu1 %v3038_v2  ;;  %2494 = vmatpush3.msra.mxu0 %v3060_v6  ;;  %v31_v16 = vld [vmem:[%s4218_s0 + $0x9] sm:$0xff]  ;;  %v3147_v19 = vld [vmem:[%s4217_s1 + $0x80] sm:$0xff]  ;;  %v3176_v24 = vld [vmem:[%s4217_s1 + $0x138] sm:$0xff] }
   0x8   :  { %2459 = vmatprep.subr.mxu1 %v3054_v5  ;;  %2495 = vmatprep.subr.mxu0 %v3067_v7  ;;  %v20_v20 = vld [vmem:[%s4218_s0] sm:$0xff]  ;;  %v3158_v21 = vld [vmem:[%s4217_s1 + $0x28] sm:$0xff]  ;;  %v3187_v26 = vld [vmem:[%s4217_s1 + $0x18] sm:$0xff] }
   0x9   :  { %2460 = vmatpush3.msra.mxu1 %v3054_v5  ;;  %2496 = vmatpush3.msra.mxu0 %v3067_v7  ;;  %v204_v22 = vld [vmem:[%s4218_s0 + $0x2] sm:$0xff]  ;;  %v205_v25 = vld [vmem:[%s4218_s0 + $0xa] sm:$0xff]  ;;  %v3237_v33 = vld [vmem:[%s4217_s1 + $0x118] sm:$0xff] }
   0xa   :  { %2461 = vmatprep.subr.mxu1 %v3073_v8  ;;  %2497 = vmatprep.subr.mxu0 %v3081_v9  ;;  %v3170_v23 = vld [vmem:[%s4217_s1 + $0x20] sm:$0xff]  ;;  %v3195_v27 = vld [vmem:[%s4217_s1 + $0x130] sm:$0xff]  ;;  %v3209_v29 = vld [vmem:[%s4217_s1 + $0x128] sm:$0xff] }
   0xb   :  { %2462 = vmatpush3.msra.mxu1 %v3073_v8  ;;  %2498 = vmatpush3.msra.mxu0 %v3081_v9  ;;  %v3201_v28 = vld [vmem:[%s4217_s1 + $0x10] sm:$0xff]  ;;  %v3215_v30 = vld [vmem:[%s4217_s1 + $0x8] sm:$0xff]  ;;  %v3223_v31 = vld [vmem:[%s4217_s1 + $0x120] sm:$0xff] }
   0xc   :  { %2463 = vmatprep.subr.mxu1 %v3087_v10  ;;  %2499 = vmatprep.subr.mxu0 %v3095_v11  ;;  %v3229_v32 = vld [vmem:[%s4217_s1] sm:$0xff]  ;;  %v21_v34 = vld [vmem:[%s4218_s0 + $0x8] sm:$0xff]  ;;  %v3246_v35 = vld [vmem:[%s4217_s1 + $0xf8] sm:$0xff] }
   0xd   :  { %2464 = vmatpush3.msra.mxu1 %v3087_v10  ;;  %2500 = vmatpush3.msra.mxu0 %v3095_v11  ;;  %v3255_v36 = vld [vmem:[%s4217_s1 + $0xf0] sm:$0xff]  ;;  %v3269_v38 = vld [vmem:[%s4217_s1 + $0xe8] sm:$0xff]  ;;  %v3283_v40 = vld [vmem:[%s4217_s1 + $0xe0] sm:$0xff] }
   0xe   :  { %2465 = vmatprep.subr.mxu1 %v3101_v12  ;;  %2501 = vmatprep.subr.mxu0 %v3109_v13  ;;  %v3261_v37 = vld [vmem:[%s4217_s1 + $0x110] sm:$0xff]  ;;  %v3275_v39 = vld [vmem:[%s4217_s1 + $0x108] sm:$0xff]  ;;  %v3289_v41 = vld [vmem:[%s4217_s1 + $0x100] sm:$0xff] }
   0xf   :  { %2466 = vmatpush3.msra.mxu1 %v3101_v12  ;;  %2502 = vmatpush3.msra.mxu0 %v3109_v13  ;;  %4315 = vst [vmem:[#allocation3_spill] sm:$0xff] %v3275_v39  ;;  %4316 = vst [vmem:[#allocation4_spill] sm:$0xff] %v3289_v41  ;;  %v298_v42 = vld [vmem:[%s4218_s0 + $0x3] sm:$0xff]  ;;  %v3300_v43 = vld [vmem:[%s4217_s1 + $0xd8] sm:$0xff] }
  0x10   :  { %2467 = vmatprep.subr.mxu1 %v3115_v14  ;;  %2503 = vmatprep.subr.mxu0 %v3123_v15  ;;  %v392_v44 = vld [vmem:[%s4218_s0 + $0x4] sm:$0xff]  ;;  %v3312_v45 = vld [vmem:[%s4217_s1 + $0xd0] sm:$0xff]  ;;  %v3346_v50 = vld [vmem:[%s4219_s3 + $0x78] sm:$0xff] }
  0x11   :  { %2468 = vmatpush3.msra.mxu1 %v3115_v14  ;;  %2504 = vmatpush3.msra.mxu0 %v3123_v15  ;;  %v393_v46 = vld [vmem:[%s4218_s0 + $0xc] sm:$0xff]  ;;  %v3333_v48 = vld [vmem:[%s4217_s1 + $0xc0] sm:$0xff]  ;;  %4317 = vst [vmem:[#allocation5_spill] sm:$0xff] %v3346_v50  ;;  %v3358_v52 = vld [vmem:[%s4219_s3 + $0xf8] sm:$0xff] }
  0x12   :  { %2470 = vmatmul.mubr.msk.f32.vlgmr.msra.gmra.mxu1 %vm41_vm0, %v31_v16  ;;  %2472 = vmatprep.subr.mxu1 %v3132_v17  ;;  %v3324_v47 = vld [vmem:[%s4217_s1 + $0xc8] sm:$0xff]  ;;  %v3353_v51 = vld [vmem:[%s4219_s3 + $0x70] sm:$0xff]  ;;  %v3380_v55 = vld [vmem:[%s4219_s3 + $0x60] sm:$0xff] }
  0x13   :  { %2473 = vmatpush3.msra.mxu1 %v3132_v17  ;;  %2505 = vmatprep.subr.mxu0 %v3147_v19  ;;  %v299_v49 = vld [vmem:[%s4218_s0 + $0xb] sm:$0xff]  ;;  %4318 = vst [vmem:[#allocation6_spill] sm:$0xff] %v3353_v51  ;;  %4320 = vst [vmem:[#allocation8_spill] sm:$0xff] %v3380_v55  ;;  %v3393_v57 = vld [vmem:[%s4219_s3 + $0xe0] sm:$0xff] }
  0x14   :  { %2474 = vmatprep.subr.mxu1 %v3141_v18  ;;  %2488 = vmatprep.mubr.msk.f32.mxu1 %vm41_vm0, %v20_v20  ;;  %v3366_v53 = vld [vmem:[%s4219_s3 + $0x68] sm:$0xff]  ;;  %v3372_v54 = vld [vmem:[%s4219_s3 + $0xf0] sm:$0xff]  ;;  %v3399_v58 = vld [vmem:[%s4219_s3 + $0x58] sm:$0xff] }
  0x15   :  { %2475 = vmatpush3.msra.mxu1 %v3141_v18  ;;  %2506 = vmatpush3.msra.mxu0 %v3147_v19  ;;  %4319 = vst [vmem:[#allocation7_spill] sm:$0xff] %v3366_v53  ;;  %v3386_v56 = vld [vmem:[%s4219_s3 + $0xe8] sm:$0xff]  ;;  %4321 = vst [vmem:[#allocation9_spill] sm:$0xff] %v3399_v58  ;;  %v3405_v59 = vld [vmem:[%s4219_s3 + $0xd8] sm:$0xff] }
  0x16   :  { %2476 = vmatprep.subr.mxu1 %v3158_v21  ;;  %2507 = vmatprep.mubr.msk.f32.mxu0 %vm41_vm0, %v204_v22  ;;  %4322 = vst [vmem:[#allocation10_spill] sm:$0xff] %v3405_v59  ;;  %v3411_v60 = vld [vmem:[%s4219_s3 + $0x50] sm:$0xff]  ;;  %v3418_v61 = vld [vmem:[%s4219_s3 + $0x48] sm:$0xff]  ;;  %v3432_v63 = vld [vmem:[%s4219_s3 + $0x40] sm:$0xff] }
  0x17   :  { %2477 = vmatpush3.msra.mxu1 %v3158_v21  ;;  %2529 = vmatprep.subr.mxu0 %v3176_v24  ;;  %4323 = vst [vmem:[#allocation11_spill] sm:$0xff] %v3411_v60  ;;  %4324 = vst [vmem:[#allocation12_spill] sm:$0xff] %v3418_v61  ;;  %v3424_v62 = vld [vmem:[%s4219_s3 + $0xd0] sm:$0xff]  ;;  %v3438_v3 = vld [vmem:[%s4219_s3 + $0xc8] sm:$0xff] }
  0x18   :  { %2478 = vmatprep.subr.mxu1 %v3170_v23  ;;  %2508 = vmatmul.mubr.msk.f32.vlgmr.msra.gmra.mxu0 %vm41_vm0, %v205_v25  ;;  %4325 = vst [vmem:[#allocation13_spill] sm:$0xff] %v3424_v62  ;;  %4326 = vst [vmem:[#allocation14_spill] sm:$0xff] %v3432_v63  ;;  %v3447_v16 = vld [vmem:[%s4219_s3 + $0xc0] sm:$0xff]  ;;  %v3455_v20 = vld [vmem:[%s4219_s3 + $0x38] sm:$0xff] }
  0x19   :  { %2479 = vmatpush3.msra.mxu1 %v3170_v23  ;;  %2530 = vmatpush3.msra.mxu0 %v3176_v24  ;;  %4327 = vst [vmem:[#allocation15_spill] sm:$0xff] %v3438_v3  ;;  %4328 = vst [vmem:[#allocation16_spill] sm:$0xff] %v3447_v16  ;;  %v3464_v22 = vld [vmem:[%s4219_s3 + $0x30] sm:$0xff]  ;;  %v3470_v25 = vld [vmem:[%s4219_s3 + $0xb8] sm:$0xff] }
  0x1a   :  { %2480 = vmatprep.subr.mxu1 %v3187_v26  ;;  %2531 = vmatprep.subr.mxu0 %v3195_v27  ;;  %4329 = vst [vmem:[#allocation17_spill] sm:$0xff] %v3455_v20  ;;  %4330 = vst [vmem:[#allocation18_spill] sm:$0xff] %v3464_v22 }
  0x1b   :  { %2481 = vmatpush3.msra.mxu1 %v3187_v26  ;;  %2532 = vmatpush3.msra.mxu0 %v3195_v27  ;;  %4331 = vst [vmem:[#allocation19_spill] sm:$0xff] %v3470_v25 }
  0x1c   :  { %2482 = vmatprep.subr.mxu1 %v3201_v28  ;;  %2533 = vmatprep.subr.mxu0 %v3209_v29 }
  0x1d   :  { %2483 = vmatpush3.msra.mxu1 %v3201_v28  ;;  %2534 = vmatpush3.msra.mxu0 %v3209_v29 }
  0x1e   :  { %2484 = vmatprep.subr.mxu1 %v3215_v30  ;;  %2535 = vmatprep.subr.mxu0 %v3223_v31 }
  0x1f   :  { %2485 = vmatpush3.msra.mxu1 %v3215_v30  ;;  %2536 = vmatpush3.msra.mxu0 %v3223_v31 }
  0x20   :  { %2486 = vmatprep.subr.mxu1 %v3229_v32  ;;  %2537 = vmatprep.subr.mxu0 %v3237_v33 }
  0x21   :  { %2487 = vmatpush3.msra.mxu1 %v3229_v32  ;;  %2538 = vmatpush3.msra.mxu0 %v3237_v33 }
  0x22   :  { %2489 = vmatmul.mubr.msk.f32.vlgmr.msra.gmra.mxu1 %vm41_vm0, %v21_v34  ;;  %2510 = vmatprep.subr.mxu1 %v3246_v35  ;;  %v3478_v34 = vld [vmem:[%s4219_s3 + $0x28] sm:$0xff] }
  0x23   :  { %2511 = vmatpush3.msra.mxu1 %v3246_v35  ;;  %2539 = vmatprep.subr.mxu0 %v3261_v37  ;;  %4332 = vst [vmem:[#allocation20_spill] sm:$0xff] %v3478_v34 }
  0x24   :  { %2512 = vmatprep.subr.mxu1 %v3255_v36  ;;  %2540 = vmatpush3.msra.mxu0 %v3261_v37 }
  0x25   :  { %2513 = vmatpush3.msra.mxu1 %v3255_v36  ;;  %2541 = vmatprep.subr.mxu0 %v3275_v39 }
  0x26   :  { %2514 = vmatprep.subr.mxu1 %v3269_v38  ;;  %2542 = vmatpush3.msra.mxu0 %v3275_v39 }
  0x27   :  { %2515 = vmatpush3.msra.mxu1 %v3269_v38  ;;  %2543 = vmatprep.subr.mxu0 %v3289_v41 }
  0x28   :  { %2516 = vmatprep.subr.mxu1 %v3283_v40  ;;  %2526 = vmatprep.mubr.msk.f32.mxu1 %vm41_vm0, %v298_v42  ;;  %v3484_v42 = vld [vmem:[%s4219_s3 + $0xb0] sm:$0xff] }
  0x29   :  { %2517 = vmatpush3.msra.mxu1 %v3283_v40  ;;  %2544 = vmatpush3.msra.mxu0 %v3289_v41  ;;  %4333 = vst [vmem:[#allocation21_spill] sm:$0xff] %v3484_v42 }
  0x2a   :  { %2518 = vmatprep.subr.mxu1 %v3300_v43  ;;  %2545 = vmatprep.mubr.msk.f32.mxu0 %vm41_vm0, %v392_v44  ;;  %v3492_v44 = vld [vmem:[%s4219_s3 + $0x20] sm:$0xff] }
  0x2b   :  { %2519 = vmatpush3.msra.mxu1 %v3300_v43  ;;  %2546 = vmatmul.mubr.msk.f32.vlgmr.msra.gmra.mxu0 %vm41_vm0, %v393_v46  ;;  %4334 = vst [vmem:[#allocation22_spill] sm:$0xff] %v3492_v44  ;;  %v3498_v46 = vld [vmem:[%s4219_s3 + $0xa8] sm:$0xff] }
  0x2c   :  { %2520 = vmatprep.subr.mxu1 %v3312_v45  ;;  %2583 = vmatprep.subr.mxu0 %v3346_v50  ;;  %4335 = vst [vmem:[#allocation23_spill] sm:$0xff] %v3498_v46 }
  0x2d   :  { %2521 = vmatpush3.msra.mxu1 %v3312_v45  ;;  %2584 = vmatpush3.msra.mxu0 %v3346_v50 }
  0x2e   :  { %2522 = vmatprep.subr.mxu1 %v3324_v47  ;;  %2585 = vmatprep.subr.mxu0 %v3353_v51 }
  0x2f   :  { %2523 = vmatpush3.msra.mxu1 %v3324_v47  ;;  %2586 = vmatpush3.msra.mxu0 %v3353_v51  ;;  %v3582_v51 = vld [vmem:[%s4220_s2] ss:$0 sm:$0xff] }
  0x30   :  { %2524 = vmatprep.subr.mxu1 %v3333_v48  ;;  %2587 = vmatprep.subr.mxu0 %v3366_v53 }
  0x31   :  { %2525 = vmatpush3.msra.mxu1 %v3333_v48  ;;  %2588 = vmatpush3.msra.mxu0 %v3366_v53 }
  0x32   :  { %2527 = vmatmul.mubr.msk.f32.vlgmr.msra.gmra.mxu1 %vm41_vm0, %v299_v49  ;;  %2548 = vmatprep.subr.mxu1 %v3358_v52  ;;  %v3506_v49 = vld [vmem:[%s4219_s3 + $0x18] sm:$0xff] }
  0x33   :  { %2549 = vmatpush3.msra.mxu1 %v3358_v52  ;;  %2589 = vmatprep.subr.mxu0 %v3380_v55  ;;  %4336 = vst [vmem:[#allocation24_spill] sm:$0xff] %v3506_v49 }
  0x34   :  { %2550 = vmatprep.subr.mxu1 %v3372_v54  ;;  %2590 = vmatpush3.msra.mxu0 %v3380_v55 }
  0x35   :  { %2551 = vmatpush3.msra.mxu1 %v3372_v54  ;;  %2591 = vmatprep.subr.mxu0 %v3399_v58 }
  0x36   :  { %2552 = vmatprep.subr.mxu1 %v3386_v56  ;;  %2592 = vmatpush3.msra.mxu0 %v3399_v58 }
  0x37   :  { %2553 = vmatpush3.msra.mxu1 %v3386_v56  ;;  %2593 = vmatprep.subr.mxu0 %v3411_v60 }
  0x38   :  { %2554 = vmatprep.subr.mxu1 %v3393_v57  ;;  %2594 = vmatpush3.msra.mxu0 %v3411_v60 }
  0x39   :  { %2555 = vmatpush3.msra.mxu1 %v3393_v57  ;;  %2595 = vmatprep.subr.mxu0 %v3418_v61 }
  0x3a   :  { %2556 = vmatprep.subr.mxu1 %v3405_v59  ;;  %2596 = vmatpush3.msra.mxu0 %v3418_v61  ;;  %v3551_v61 = vld [vmem:[%s4219_s3] sm:$0xff] }
  0x3b   :  { %2557 = vmatpush3.msra.mxu1 %v3405_v59  ;;  %2597 = vmatprep.subr.mxu0 %v3432_v63  ;;  %4343 = vst [vmem:[#allocation31_spill] sm:$0xff] %v3551_v61 }
  0x3c   :  { %2558 = vmatprep.subr.mxu1 %v3424_v62  ;;  %2598 = vmatpush3.msra.mxu0 %v3432_v63  ;;  %v3545_v63 = vld [vmem:[%s4219_s3 + $0x88] sm:$0xff] }
  0x3d   :  { %2559 = vmatpush3.msra.mxu1 %v3424_v62  ;;  %2599 = vmatprep.subr.mxu0 %v3455_v20  ;;  %4342 = vst [vmem:[#allocation30_spill] sm:$0xff] %v3545_v63 }
  0x3e   :  { %2560 = vmatprep.subr.mxu1 %v3438_v3  ;;  %2600 = vmatpush3.msra.mxu0 %v3455_v20  ;;  %v3539_v20 = vld [vmem:[%s4219_s3 + $0x8] sm:$0xff] }
  0x3f   :  { %2561 = vmatpush3.msra.mxu1 %v3438_v3  ;;  %2601 = vmatprep.subr.mxu0 %v3464_v22  ;;  %4341 = vst [vmem:[#allocation29_spill] sm:$0xff] %v3539_v20 }
  0x40   :  { %2562 = vmatprep.subr.mxu1 %v3447_v16  ;;  %2602 = vmatpush3.msra.mxu0 %v3464_v22  ;;  %v3526_v22 = vld [vmem:[%s4219_s3 + $0x98] sm:$0xff] }
  0x41   :  { %2563 = vmatpush3.msra.mxu1 %v3447_v16  ;;  %2603 = vmatprep.subr.mxu0 %v3478_v34  ;;  %4339 = vst [vmem:[#allocation27_spill] sm:$0xff] %v3526_v22 }
  0x42   :  { %2564 = vmatprep.subr.mxu1 %v3470_v25  ;;  %2604 = vmatpush3.msra.mxu0 %v3478_v34  ;;  %v3512_v34 = vld [vmem:[%s4219_s3 + $0xa0] sm:$0xff] }
  0x43   :  { %2565 = vmatpush3.msra.mxu1 %v3470_v25  ;;  %2605 = vmatprep.subr.mxu0 %v3492_v44  ;;  %4337 = vst [vmem:[#allocation25_spill] sm:$0xff] %v3512_v34 }
  0x44   :  { %2566 = vmatprep.subr.mxu1 %v3484_v42  ;;  %2606 = vmatpush3.msra.mxu0 %v3492_v44  ;;  %v3520_v44 = vld [vmem:[%s4219_s3 + $0x10] sm:$0xff] }
  0x45   :  { %2567 = vmatpush3.msra.mxu1 %v3484_v42  ;;  %2607 = vmatprep.subr.mxu0 %v3506_v49  ;;  %4338 = vst [vmem:[#allocation26_spill] sm:$0xff] %v3520_v44 }
  0x46   :  { %2568 = vmatprep.subr.mxu1 %v3498_v46  ;;  %2608 = vmatpush3.msra.mxu0 %v3506_v49  ;;  %v3533_v49 = vld [vmem:[%s4219_s3 + $0x90] sm:$0xff] }
  0x47   :  { %2569 = vmatpush3.msra.mxu1 %v3498_v46  ;;  %2609 = vmatprep.subr.mxu0 %v3520_v44  ;;  %4340 = vst [vmem:[#allocation28_spill] sm:$0xff] %v3533_v49 }
  0x48   :  { %2570 = vmatprep.subr.mxu1 %v3512_v34  ;;  %2610 = vmatpush3.msra.mxu0 %v3520_v44  ;;  %v3559_v44 = vld [vmem:[%s4219_s3 + $0x80] sm:$0xff] }
  0x49   :  { %2571 = vmatpush3.msra.mxu1 %v3512_v34  ;;  %2611 = vmatprep.subr.mxu0 %v3539_v20  ;;  %4344 = vst [vmem:[#allocation32_spill] sm:$0xff] %v3559_v44 }
  0x4a   :  { %2572 = vmatprep.subr.mxu1 %v3526_v22  ;;  %2612 = vmatpush3.msra.mxu0 %v3539_v20  ;;  %v3576_v20 = vld [vmem:[%s4219_s3 + $0x178] sm:$0xff] }
  0x4b   :  { %2573 = vmatpush3.msra.mxu1 %v3526_v22  ;;  %2613 = vmatprep.subr.mxu0 %v3551_v61  ;;  %v3567_v22 = vld [vmem:[%s4219_s3 + $0x1f8] sm:$0xff] }
  0x4c   :  { %2574 = vmatprep.subr.mxu1 %v3533_v49  ;;  %2614 = vmatpush3.msra.mxu0 %v3551_v61 }
  0x4d   :  { %2575 = vmatpush3.msra.mxu1 %v3533_v49  ;;  %2653 = vmatprep.subr.mxu0 %v3567_v22 }
  0x4e   :  { %2576 = vmatprep.subr.mxu1 %v3545_v63 }
  0x4f   :  { %2577 = vmatpush3.msra.mxu1 %v3545_v63 }
  0x50   :  { %2578 = vmatprep.subr.mxu1 %v3559_v44 }
  0x51   :  { %2579 = vmatpush3.msra.mxu1 %v3559_v44 }
  0x52   :  { %2618 = vmatprep.subr.mxu1 %v3576_v20 }
  0xd2   :  { %v2471_v61 = vpop.f32.mrf.mxu1 }
  0xd4   :  { %v114_v49 = vpop.f32.mrf.mxu1 }
  0xd8   :  { %v2509_v60 = vpop.f32.mrf.mxu0 }
  0xda   :  { %v287_v42 = vpop.f32.mrf.mxu0 }
  0xe2   :  { %v2490_v34 = vpop.f32.mrf.mxu1 }
  0xe3   :  { %v201_v58 = vadd.f32 %v2490_v34, %v2471_v61  ;;  %v3642_v34 = vld [vmem:[%s4219_s3 + $0x1d0] sm:$0xff] }
  0xe4   :  { %v195_v46 = vpop.f32.mrf.mxu1 }
  0xe5   :  { %v196_v63 = vadd.f32 %v195_v46, %v114_v49  ;;  %v297_v55 = vadd.f32 %v2509_v60, %v201_v58  ;;  %v3663_v46 = vld [vmem:[%s4219_s3 + $0x148] sm:$0xff]  ;;  %v3670_v49 = vld [vmem:[%s4219_s3 + $0x1c0] sm:$0xff] }
  0xe6   :  { %4345 = vst [vmem:[#allocation33_spill] sm:$0xff] %v3670_v49 }
  0xe7   :  { %v296_v16 = vadd.f32 %v287_v42, %v196_v63  ;;  %v3649_v42 = vld [vmem:[%s4219_s3 + $0x150] sm:$0xff] }
  0xeb   :  { %v2547_v53 = vpop.f32.mrf.mxu0 }
  0xed   :  { %v475_v41 = vpop.f32.mrf.mxu0 }
  0xf2   :  { %v2528_v25 = vpop.f32.mrf.mxu1 }
  0xf3   :  { %v391_v44 = vadd.f32 %v2528_v25, %v297_v55  ;;  %v3589_v55 = vld [vmem:[%s4219_s3 + $0x1f0] sm:$0xff]  ;;  %v3635_v25 = vld [vmem:[%s4219_s3 + $0x158] sm:$0xff] }
  0xf4   :  { %v381_v3 = vpop.f32.mrf.mxu1 }
  0xf5   :  { %v485_v50 = vadd.f32 %v2547_v53, %v391_v44  ;;  %v390_v62 = vadd.f32 %v381_v3, %v296_v16  ;;  %v3621_v3 = vld [vmem:[%s4219_s3 + $0x160] sm:$0xff]  ;;  %v3628_v16 = vld [vmem:[%s4219_s3 + $0x1d8] sm:$0xff]  ;;  %v3656_v44 = vld [vmem:[%s4219_s3 + $0x1c8] sm:$0xff] }
  0xf7   :  { %v494_v59 = vadd.f32 %v3582_v51, %v485_v50  ;;  %v484_v39 = vadd.f32 %v475_v41, %v390_v62  ;;  %v3595_v41 = vld [vmem:[%s4219_s3 + $0x170] sm:$0xff]  ;;  %v3601_v50 = vld [vmem:[%s4219_s3 + $0x1e8] sm:$0xff]  ;;  %v3614_v62 = vld [vmem:[%s4219_s3 + $0x1e0] sm:$0xff] }
  0xf9   :  { %496 = vst [vmem:[#allocation2 + $0x8] sm:$0xff] %v494_v59  ;;  %v493_v61 = vadd.f32 %v3582_v51, %v484_v39  ;;  %v3607_v59 = vld [vmem:[%s4219_s3 + $0x168] sm:$0xff] }
  0xfb   :  { %495 = vst [vmem:[#allocation2] sm:$0xff] %v493_v61  ;;  %2615 = vmatprep.mubr.f32.mxu0 %v493_v61  ;;  %v3677_v61 = vld [vmem:[%s4219_s3 + $0x140] sm:$0xff] }
  0xfc   :  { %4346 = vst [vmem:[#allocation34_spill] sm:$0xff] %v3677_v61 }
 0x100   :  { %v498_v58 = vld [vmem:[#allocation2 + $0x8] sm:$0xf] }
 0x101   :  { %2616 = vmatmul.mubr.f32.vlgmr.msra.gmra.mxu0 %v498_v58  ;;  %v516_v63 = vld [vmem:[#allocation2 + $0x9] sm:$0xf]  ;;  %v3684_v58 = vld [vmem:[%s4219_s3 + $0x1b8] sm:$0xff] }
 0x102   :  { %v515_v60 = vld [vmem:[#allocation2 + $0x1] sm:$0xff]  ;;  %2654 = vmatpush3.msra.mxu0 %v3567_v22  ;;  %4347 = vst [vmem:[#allocation35_spill] sm:$0xff] %v3684_v58 }
 0x103   :  { %v780_v53 = vld [vmem:[#allocation2 + $0x3] sm:$0xff]  ;;  %2580 = vmatprep.mubr.f32.mxu1 %v515_v60  ;;  %2655 = vmatprep.subr.mxu0 %v3589_v55  ;;  %v3691_v60 = vld [vmem:[%s4219_s3 + $0x138] sm:$0xff] }
 0x104   :  { %2581 = vmatmul.mubr.f32.vlgmr.msra.gmra.mxu1 %v516_v63  ;;  %v684_v39 = vld [vmem:[#allocation2 + $0x2] sm:$0xff]  ;;  %2685 = vmatprep.mubr.f32.mxu0 %v780_v53  ;;  %4348 = vst [vmem:[#allocation36_spill] sm:$0xff] %v3691_v60  ;;  %v3698_v53 = vld [vmem:[%s4219_s3 + $0x1b0] sm:$0xff] }
 0x105   :  { %2619 = vmatpush3.msra.mxu1 %v3576_v20  ;;  %2650 = vmatprep.mubr.f32.mxu1 %v684_v39  ;;  %4349 = vst [vmem:[#allocation37_spill] sm:$0xff] %v3698_v53  ;;  %v3705_v63 = vld [vmem:[%s4219_s3 + $0x130] sm:$0xff]  ;;  %v3712_v39 = vld [vmem:[%s4219_s3 + $0x1a8] sm:$0xff] }
 0x106   :  { %2620 = vmatprep.subr.mxu1 %v3595_v41  ;;  %2656 = vmatpush3.msra.mxu0 %v3589_v55  ;;  %4350 = vst [vmem:[#allocation38_spill] sm:$0xff] %v3705_v63  ;;  %4351 = vst [vmem:[#allocation39_spill] sm:$0xff] %v3712_v39 }
 0x107   :  { %2621 = vmatpush3.msra.mxu1 %v3595_v41  ;;  %2657 = vmatprep.subr.mxu0 %v3601_v50 }
 0x108   :  { %2622 = vmatprep.subr.mxu1 %v3607_v59  ;;  %2658 = vmatpush3.msra.mxu0 %v3601_v50 }
 0x109   :  { %2623 = vmatpush3.msra.mxu1 %v3607_v59  ;;  %2659 = vmatprep.subr.mxu0 %v3614_v62 }
 0x10a   :  { %2624 = vmatprep.subr.mxu1 %v3621_v3  ;;  %2660 = vmatpush3.msra.mxu0 %v3614_v62 }
 0x10b   :  { %2625 = vmatpush3.msra.mxu1 %v3621_v3  ;;  %2661 = vmatprep.subr.mxu0 %v3628_v16 }
 0x10c   :  { %2626 = vmatprep.subr.mxu1 %v3635_v25  ;;  %2662 = vmatpush3.msra.mxu0 %v3628_v16 }
 0x10d   :  { %2627 = vmatpush3.msra.mxu1 %v3635_v25  ;;  %2663 = vmatprep.subr.mxu0 %v3642_v34 }
 0x10e   :  { %2628 = vmatprep.subr.mxu1 %v3649_v42  ;;  %2664 = vmatpush3.msra.mxu0 %v3642_v34 }
 0x10f   :  { %2629 = vmatpush3.msra.mxu1 %v3649_v42  ;;  %2665 = vmatprep.subr.mxu0 %v3656_v44 }
 0x110   :  { %2630 = vmatprep.subr.mxu1 %v3663_v46  ;;  %2666 = vmatpush3.msra.mxu0 %v3656_v44 }
 0x111   :  { %2631 = vmatpush3.msra.mxu1 %v3663_v46  ;;  %2667 = vmatprep.subr.mxu0 %v3670_v49 }
 0x112   :  { %2632 = vmatprep.subr.mxu1 %v3677_v61  ;;  %2668 = vmatpush3.msra.mxu0 %v3670_v49  ;;  %v685_v49 = vld [vmem:[#allocation2 + $0xa] sm:$0xf] }
 0x113   :  { %2633 = vmatpush3.msra.mxu1 %v3677_v61  ;;  %2669 = vmatprep.subr.mxu0 %v3684_v58  ;;  %v3719_v61 = vld [vmem:[%s4219_s3 + $0x128] sm:$0xff] }
 0x114   :  { %2634 = vmatprep.subr.mxu1 %v3691_v60  ;;  %2670 = vmatpush3.msra.mxu0 %v3684_v58  ;;  %4352 = vst [vmem:[#allocation40_spill] sm:$0xff] %v3719_v61  ;;  %v3726_v58 = vld [vmem:[%s4219_s3 + $0x1a0] sm:$0xff] }
 0x115   :  { %2635 = vmatpush3.msra.mxu1 %v3691_v60  ;;  %2671 = vmatprep.subr.mxu0 %v3698_v53  ;;  %4353 = vst [vmem:[#allocation41_spill] sm:$0xff] %v3726_v58  ;;  %v3733_v60 = vld [vmem:[%s4219_s3 + $0x120] sm:$0xff] }
 0x116   :  { %2636 = vmatprep.subr.mxu1 %v3705_v63  ;;  %2672 = vmatpush3.msra.mxu0 %v3698_v53  ;;  %4354 = vst [vmem:[#allocation42_spill] sm:$0xff] %v3733_v60  ;;  %v3740_v53 = vld [vmem:[%s4219_s3 + $0x198] sm:$0xff] }
 0x117   :  { %2637 = vmatpush3.msra.mxu1 %v3705_v63  ;;  %2673 = vmatprep.subr.mxu0 %v3712_v39  ;;  %4355 = vst [vmem:[#allocation43_spill] sm:$0xff] %v3740_v53  ;;  %v3747_v63 = vld [vmem:[%s4219_s3 + $0x118] sm:$0xff] }
 0x118   :  { %2638 = vmatprep.subr.mxu1 %v3719_v61  ;;  %2674 = vmatpush3.msra.mxu0 %v3712_v39  ;;  %4356 = vst [vmem:[#allocation44_spill] sm:$0xff] %v3747_v63  ;;  %v3754_v39 = vld [vmem:[%s4219_s3 + $0x190] sm:$0xff] }
 0x119   :  { %2639 = vmatpush3.msra.mxu1 %v3719_v61  ;;  %2675 = vmatprep.subr.mxu0 %v3726_v58  ;;  %4357 = vst [vmem:[#allocation45_spill] sm:$0xff] %v3754_v39  ;;  %v3761_v61 = vld [vmem:[%s4219_s3 + $0x110] sm:$0xff] }
 0x11a   :  { %2640 = vmatprep.subr.mxu1 %v3733_v60  ;;  %2676 = vmatpush3.msra.mxu0 %v3726_v58  ;;  %4358 = vst [vmem:[#allocation46_spill] sm:$0xff] %v3761_v61  ;;  %v3768_v58 = vld [vmem:[%s4219_s3 + $0x188] sm:$0xff] }
 0x11b   :  { %2641 = vmatpush3.msra.mxu1 %v3733_v60  ;;  %2677 = vmatprep.subr.mxu0 %v3740_v53  ;;  %4359 = vst [vmem:[#allocation47_spill] sm:$0xff] %v3768_v58  ;;  %v3775_v60 = vld [vmem:[%s4219_s3 + $0x108] sm:$0xff] }
 0x11c   :  { %2642 = vmatprep.subr.mxu1 %v3747_v63  ;;  %2678 = vmatpush3.msra.mxu0 %v3740_v53  ;;  %4360 = vst [vmem:[#allocation48_spill] sm:$0xff] %v3775_v60  ;;  %v3782_v53 = vld [vmem:[%s4219_s3 + $0x180] sm:$0xff] }
 0x11d   :  { %2643 = vmatpush3.msra.mxu1 %v3747_v63  ;;  %2679 = vmatprep.subr.mxu0 %v3754_v39  ;;  %v3789_v63 = vld [vmem:[%s4219_s3 + $0x100] sm:$0xff] }
 0x11e   :  { %2644 = vmatprep.subr.mxu1 %v3761_v61  ;;  %2680 = vmatpush3.msra.mxu0 %v3754_v39  ;;  %v3798_v39 = vld [vmem:[%s4219_s3 + $0x278] sm:$0xff] }
 0x11f   :  { %2645 = vmatpush3.msra.mxu1 %v3761_v61  ;;  %2681 = vmatprep.subr.mxu0 %v3768_v58  ;;  %v781_v61 = vld [vmem:[#allocation2 + $0xb] sm:$0xf] }
 0x120   :  { %2646 = vmatprep.subr.mxu1 %v3775_v60  ;;  %2682 = vmatpush3.msra.mxu0 %v3768_v58  ;;  %v876_v58 = vld [vmem:[#allocation2 + $0x4] sm:$0xff] }
 0x121   :  { %2647 = vmatpush3.msra.mxu1 %v3775_v60  ;;  %2683 = vmatprep.subr.mxu0 %v3782_v53  ;;  %v3807_v60 = vld [vmem:[%s4219_s3 + $0x270] sm:$0xff] }
 0x122   :  { %2648 = vmatprep.subr.mxu1 %v3789_v63  ;;  %2684 = vmatpush3.msra.mxu0 %v3782_v53 }
 0x123   :  { %2649 = vmatpush3.msra.mxu1 %v3789_v63  ;;  %2686 = vmatmul.mubr.f32.vlgmr.msra.gmra.mxu0 %v781_v61  ;;  %v3815_v61 = vld [vmem:[%s4219_s3 + $0x268] sm:$0xff] }
 0x124   :  { %2651 = vmatmul.mubr.f32.vlgmr.msra.gmra.mxu1 %v685_v49  ;;  %2688 = vmatprep.subr.mxu1 %v3798_v39  ;;  %v3824_v49 = vld [vmem:[%s4219_s3 + $0x260] sm:$0xff] }
 0x125   :  { %2723 = vmatprep.subr.mxu0 %v3026_v0  ;;  %2689 = vmatpush3.msra.mxu1 %v3798_v39 }
 0x126   :  { %2720 = vmatprep.mubr.f32.mxu1 %v876_v58  ;;  %2724 = vmatpush3.msra.mxu0 %v3026_v0  ;;  %v3833_v0 = vld [vmem:[%s4219_s3 + $0x258] sm:$0xff]  ;;  %v3884_v58 = vld [vmem:[%s4219_s3 + $0x230] sm:$0xff] }
 0x127   :  { %2690 = vmatprep.subr.mxu1 %v3807_v60  ;;  %2725 = vmatprep.subr.mxu0 %v3031_v1 }
 0x128   :  { %2691 = vmatpush3.msra.mxu1 %v3807_v60  ;;  %2726 = vmatpush3.msra.mxu0 %v3031_v1  ;;  %v3842_v1 = vld [vmem:[%s4219_s3 + $0x250] sm:$0xff] }
 0x129   :  { %2692 = vmatprep.subr.mxu1 %v3815_v61  ;;  %2727 = vmatprep.subr.mxu0 %v3038_v2 }
 0x12a   :  { %2693 = vmatpush3.msra.mxu1 %v3815_v61  ;;  %2728 = vmatpush3.msra.mxu0 %v3038_v2  ;;  %v3851_v2 = vld [vmem:[%s4219_s3 + $0x248] sm:$0xff] }
 0x12b   :  { %2694 = vmatprep.subr.mxu1 %v3824_v49  ;;  %2729 = vmatprep.subr.mxu0 %v3054_v5 }
 0x12c   :  { %2695 = vmatpush3.msra.mxu1 %v3824_v49  ;;  %2730 = vmatpush3.msra.mxu0 %v3054_v5  ;;  %v3860_v5 = vld [vmem:[%s4219_s3 + $0x240] sm:$0xff] }
 0x12d   :  { %2696 = vmatprep.subr.mxu1 %v3833_v0  ;;  %2731 = vmatprep.subr.mxu0 %v3073_v8 }
 0x12e   :  { %2697 = vmatpush3.msra.mxu1 %v3833_v0  ;;  %2732 = vmatpush3.msra.mxu0 %v3073_v8  ;;  %v3869_v8 = vld [vmem:[%s4219_s3 + $0x238] sm:$0xff] }
 0x12f   :  { %2698 = vmatprep.subr.mxu1 %v3842_v1  ;;  %2733 = vmatprep.subr.mxu0 %v3087_v10 }
 0x130   :  { %2699 = vmatpush3.msra.mxu1 %v3842_v1  ;;  %2734 = vmatpush3.msra.mxu0 %v3087_v10  ;;  %v2055_v10 = vld [vmem:[%s4218_s0 + $0x19] sm:$0xff] }
 0x131   :  { %2700 = vmatprep.subr.mxu1 %v3851_v2  ;;  %2735 = vmatprep.subr.mxu0 %v3101_v12 }
 0x132   :  { %2701 = vmatpush3.msra.mxu1 %v3851_v2  ;;  %2736 = vmatpush3.msra.mxu0 %v3101_v12  ;;  %v2056_v12 = vld [vmem:[%s4218_s0 + $0x21] sm:$0xff] }
 0x133   :  { %2702 = vmatprep.subr.mxu1 %v3860_v5  ;;  %2737 = vmatprep.subr.mxu0 %v3115_v14 }
 0x134   :  { %2703 = vmatpush3.msra.mxu1 %v3860_v5  ;;  %2738 = vmatpush3.msra.mxu0 %v3115_v14  ;;  %v3893_v14 = vld [vmem:[%s4219_s3 + $0x228] sm:$0xff] }
 0x135   :  { %2704 = vmatprep.subr.mxu1 %v3869_v8  ;;  %2739 = vmatprep.mubr.msk.f32.mxu0 %vm41_vm0, %v2055_v10  ;;  %v3902_v10 = vld [vmem:[%s4219_s3 + $0x220] sm:$0xff] }
 0x136   :  { %2742 = vmatprep.subr.mxu0 %v3132_v17  ;;  %2705 = vmatpush3.msra.mxu1 %v3869_v8 }
 0x137   :  { %2740 = vmatmul.mubr.msk.f32.vlgmr.msra.gmra.mxu0 %vm41_vm0, %v2056_v12  ;;  %2706 = vmatprep.subr.mxu1 %v3884_v58  ;;  %v3911_v12 = vld [vmem:[%s4219_s3 + $0x218] sm:$0xff] }
 0x138   :  { %2743 = vmatpush3.msra.mxu0 %v3132_v17  ;;  %2707 = vmatpush3.msra.mxu1 %v3884_v58  ;;  %v3920_v17 = vld [vmem:[%s4219_s3 + $0x210] sm:$0xff] }
 0x139   :  { %2744 = vmatprep.subr.mxu0 %v3141_v18  ;;  %2708 = vmatprep.subr.mxu1 %v3893_v14 }
 0x13a   :  { %2745 = vmatpush3.msra.mxu0 %v3141_v18  ;;  %2709 = vmatpush3.msra.mxu1 %v3893_v14  ;;  %v3929_v18 = vld [vmem:[%s4219_s3 + $0x208] sm:$0xff] }
 0x13b   :  { %2746 = vmatprep.subr.mxu0 %v3158_v21  ;;  %2710 = vmatprep.subr.mxu1 %v3902_v10 }
 0x13c   :  { %2747 = vmatpush3.msra.mxu0 %v3158_v21  ;;  %2711 = vmatpush3.msra.mxu1 %v3902_v10  ;;  %v3938_v21 = vld [vmem:[%s4219_s3 + $0x200] sm:$0xff] }
 0x13d   :  { %2748 = vmatprep.subr.mxu0 %v3170_v23  ;;  %2712 = vmatprep.subr.mxu1 %v3911_v12 }
 0x13e   :  { %2749 = vmatpush3.msra.mxu0 %v3170_v23  ;;  %2713 = vmatpush3.msra.mxu1 %v3911_v12  ;;  %v2053_v23 = vld [vmem:[%s4218_s0 + $0x18] sm:$0xff] }
 0x13f   :  { %2750 = vmatprep.subr.mxu0 %v3187_v26  ;;  %2714 = vmatprep.subr.mxu1 %v3920_v17 }
 0x140   :  { %2751 = vmatpush3.msra.mxu0 %v3187_v26  ;;  %2715 = vmatpush3.msra.mxu1 %v3920_v17  ;;  %v2054_v26 = vld [vmem:[%s4218_s0 + $0x20] sm:$0xff] }
 0x141   :  { %2752 = vmatprep.subr.mxu0 %v3201_v28  ;;  %2716 = vmatprep.subr.mxu1 %v3929_v18 }
 0x142   :  { %2753 = vmatpush3.msra.mxu0 %v3201_v28  ;;  %2717 = vmatpush3.msra.mxu1 %v3929_v18  ;;  %v877_v28 = vld [vmem:[#allocation2 + $0xc] sm:$0xf] }
 0x143   :  { %2754 = vmatprep.subr.mxu0 %v3215_v30  ;;  %2718 = vmatprep.subr.mxu1 %v3938_v21 }
 0x144   :  { %2755 = vmatpush3.msra.mxu0 %v3215_v30  ;;  %2719 = vmatpush3.msra.mxu1 %v3938_v21  ;;  %v4366_v30 = vld [vmem:[#allocation15_spill] sm:$0xff] }
 0x145   :  { %2756 = vmatprep.subr.mxu0 %v3229_v32  ;;  %2758 = vmatprep.mubr.msk.f32.mxu0 %vm41_vm0, %v2053_v23  ;;  %v4383_v23 = vld [vmem:[#allocation18_spill] sm:$0xff] }
 0x146   :  { %2757 = vmatpush3.msra.mxu0 %v3229_v32  ;;  %2721 = vmatmul.mubr.f32.vlgmr.msra.gmra.mxu1 %v877_v28  ;;  %v4368_v32 = vld [vmem:[#allocation16_spill] sm:$0xff] }
 0x147   :  { %2759 = vmatmul.mubr.msk.f32.vlgmr.msra.gmra.mxu0 %vm41_vm0, %v2054_v26  ;;  %2761 = vmatprep.subr.mxu1 %v3048_v4  ;;  %v4384_v26 = vld [vmem:[#allocation32_spill] sm:$0xff] }
 0x148   :  { %2762 = vmatpush3.msra.mxu1 %v3048_v4  ;;  %2780 = vmatprep.subr.mxu0 %v3246_v35  ;;  %v2069_v4 = vld [vmem:[%s4218_s0 + $0x1a] sm:$0xff] }
 0x149   :  { %2763 = vmatprep.subr.mxu1 %v3060_v6  ;;  %2781 = vmatpush3.msra.mxu0 %v3246_v35  ;;  %v4370_v35 = vld [vmem:[#allocation19_spill] sm:$0xff]  ;;  %v4385_v28 = vld [vmem:[#allocation20_spill] sm:$0xff] }
 0x14a   :  { %2764 = vmatpush3.msra.mxu1 %v3060_v6  ;;  %2782 = vmatprep.subr.mxu0 %v3255_v36  ;;  %v2070_v6 = vld [vmem:[%s4218_s0 + $0x22] sm:$0xff] }
 0x14b   :  { %2765 = vmatprep.subr.mxu1 %v3067_v7  ;;  %2783 = vmatpush3.msra.mxu0 %v3255_v36  ;;  %v4371_v36 = vld [vmem:[#allocation8_spill] sm:$0xff] }
 0x14c   :  { %2766 = vmatpush3.msra.mxu1 %v3067_v7  ;;  %2784 = vmatprep.subr.mxu0 %v3269_v38  ;;  %v2081_v7 = vld [vmem:[%s4218_s0 + $0x1b] sm:$0xff] }
 0x14d   :  { %2767 = vmatprep.subr.mxu1 %v3081_v9  ;;  %2785 = vmatpush3.msra.mxu0 %v3269_v38  ;;  %v4373_v38 = vld [vmem:[#allocation9_spill] sm:$0xff] }
 0x14e   :  { %2768 = vmatpush3.msra.mxu1 %v3081_v9  ;;  %2786 = vmatprep.subr.mxu0 %v3283_v40  ;;  %v2082_v9 = vld [vmem:[%s4218_s0 + $0x23] sm:$0xff] }
 0x14f   :  { %2769 = vmatprep.subr.mxu1 %v3095_v11  ;;  %2787 = vmatpush3.msra.mxu0 %v3283_v40  ;;  %v4374_v40 = vld [vmem:[#allocation23_spill] sm:$0xff] }
 0x150   :  { %2770 = vmatpush3.msra.mxu1 %v3095_v11  ;;  %2788 = vmatprep.subr.mxu0 %v3300_v43  ;;  %v2093_v11 = vld [vmem:[%s4218_s0 + $0x1c] sm:$0xff] }
 0x151   :  { %2771 = vmatprep.subr.mxu1 %v3109_v13  ;;  %2789 = vmatpush3.msra.mxu0 %v3300_v43  ;;  %v4375_v43 = vld [vmem:[#allocation11_spill] sm:$0xff] }
 0x152   :  { %2772 = vmatpush3.msra.mxu1 %v3109_v13  ;;  %2790 = vmatprep.subr.mxu0 %v3312_v45  ;;  %v4361_v13 = vld [vmem:[#allocation3_spill] sm:$0xff] }
 0x153   :  { %2773 = vmatprep.subr.mxu1 %v3123_v15  ;;  %2791 = vmatpush3.msra.mxu0 %v3312_v45  ;;  %v4376_v45 = vld [vmem:[#allocation25_spill] sm:$0xff] }
 0x154   :  { %2774 = vmatpush3.msra.mxu1 %v3123_v15  ;;  %2792 = vmatprep.subr.mxu0 %v3324_v47  ;;  %v4362_v15 = vld [vmem:[#allocation10_spill] sm:$0xff] }
 0x155   :  { %2775 = vmatprep.subr.mxu1 %v3147_v19  ;;  %2777 = vmatprep.mubr.msk.f32.mxu1 %vm41_vm0, %v2069_v4  ;;  %v4386_v4 = vld [vmem:[#allocation22_spill] sm:$0xff] }
 0x156   :  { %2776 = vmatpush3.msra.mxu1 %v3147_v19  ;;  %2793 = vmatpush3.msra.mxu0 %v3324_v47  ;;  %v2094_v19 = vld [vmem:[%s4218_s0 + $0x24] sm:$0xff]  ;;  %v4377_v47 = vld [vmem:[#allocation12_spill] sm:$0xff] }
 0x157   :  { %2778 = vmatmul.mubr.msk.f32.vlgmr.msra.gmra.mxu1 %vm41_vm0, %v2070_v6  ;;  %2794 = vmatprep.subr.mxu0 %v3333_v48  ;;  %v4387_v6 = vld [vmem:[#allocation24_spill] sm:$0xff] }
 0x158   :  { %2799 = vmatprep.subr.mxu1 %v3176_v24  ;;  %2795 = vmatpush3.msra.mxu0 %v3333_v48  ;;  %v4378_v48 = vld [vmem:[#allocation27_spill] sm:$0xff] }
 0x159   :  { %2796 = vmatprep.mubr.msk.f32.mxu0 %vm41_vm0, %v2081_v7  ;;  %2800 = vmatpush3.msra.mxu1 %v3176_v24  ;;  %v4363_v24 = vld [vmem:[#allocation4_spill] sm:$0xff]  ;;  %v4388_v7 = vld [vmem:[#allocation26_spill] sm:$0xff] }
 0x15a   :  { %2797 = vmatmul.mubr.msk.f32.vlgmr.msra.gmra.mxu0 %vm41_vm0, %v2082_v9  ;;  %2801 = vmatprep.subr.mxu1 %v3195_v27  ;;  %v4389_v9 = vld [vmem:[#allocation29_spill] sm:$0xff] }
 0x15b   :  { %2802 = vmatpush3.msra.mxu1 %v3195_v27  ;;  %2815 = vmatprep.mubr.msk.f32.mxu1 %vm41_vm0, %v2093_v11  ;;  %v4364_v27 = vld [vmem:[#allocation13_spill] sm:$0xff]  ;;  %v4390_v11 = vld [vmem:[#allocation31_spill] sm:$0xff] }
 0x15c   :  { %2803 = vmatprep.subr.mxu1 %v3209_v29  ;;  %2818 = vmatprep.subr.mxu0 %v3358_v52 }
 0x15d   :  { %2804 = vmatpush3.msra.mxu1 %v3209_v29  ;;  %2819 = vmatpush3.msra.mxu0 %v3358_v52  ;;  %v4365_v29 = vld [vmem:[#allocation5_spill] sm:$0xff]  ;;  %v4379_v52 = vld [vmem:[#allocation14_spill] sm:$0xff] }
 0x15e   :  { %2805 = vmatprep.subr.mxu1 %v3223_v31  ;;  %2820 = vmatprep.subr.mxu0 %v3372_v54 }
 0x15f   :  { %2806 = vmatpush3.msra.mxu1 %v3223_v31  ;;  %2821 = vmatpush3.msra.mxu0 %v3372_v54  ;;  %v4367_v31 = vld [vmem:[#allocation6_spill] sm:$0xff]  ;;  %v4380_v54 = vld [vmem:[#allocation28_spill] sm:$0xff] }
 0x160   :  { %2807 = vmatprep.subr.mxu1 %v3237_v33  ;;  %2822 = vmatprep.subr.mxu0 %v3386_v56 }
 0x161   :  { %2808 = vmatpush3.msra.mxu1 %v3237_v33  ;;  %2823 = vmatpush3.msra.mxu0 %v3386_v56  ;;  %v4369_v33 = vld [vmem:[#allocation7_spill] sm:$0xff]  ;;  %v4381_v56 = vld [vmem:[#allocation17_spill] sm:$0xff] }
 0x162   :  { %2809 = vmatprep.subr.mxu1 %v3261_v37  ;;  %2824 = vmatprep.subr.mxu0 %v3393_v57 }
 0x163   :  { %2810 = vmatpush3.msra.mxu1 %v3261_v37  ;;  %2825 = vmatpush3.msra.mxu0 %v3393_v57  ;;  %v4372_v37 = vld [vmem:[#allocation21_spill] sm:$0xff]  ;;  %v4382_v57 = vld [vmem:[#allocation30_spill] sm:$0xff] }
 0x164   :  { %2811 = vmatprep.subr.mxu1 %v4361_v13  ;;  %2826 = vmatprep.subr.mxu0 %v4362_v15 }
 0x165   :  { %2812 = vmatpush3.msra.mxu1 %v4361_v13  ;;  %2827 = vmatpush3.msra.mxu0 %v4362_v15 }
 0x166   :  { %2813 = vmatprep.subr.mxu1 %v4363_v24  ;;  %2828 = vmatprep.subr.mxu0 %v4364_v27 }
 0x167   :  { %2814 = vmatpush3.msra.mxu1 %v4363_v24  ;;  %2829 = vmatpush3.msra.mxu0 %v4364_v27 }
 0x168   :  { %2816 = vmatmul.mubr.msk.f32.vlgmr.msra.gmra.mxu1 %vm41_vm0, %v2094_v19  ;;  %2853 = vmatprep.subr.mxu1 %v4365_v29 }
 0x169   :  { %2854 = vmatpush3.msra.mxu1 %v4365_v29  ;;  %2830 = vmatprep.subr.mxu0 %v4366_v30 }
 0x16a   :  { %2855 = vmatprep.subr.mxu1 %v4367_v31  ;;  %2831 = vmatpush3.msra.mxu0 %v4366_v30 }
 0x16b   :  { %2856 = vmatpush3.msra.mxu1 %v4367_v31  ;;  %2832 = vmatprep.subr.mxu0 %v4368_v32 }
 0x16c   :  { %2857 = vmatprep.subr.mxu1 %v4369_v33  ;;  %2833 = vmatpush3.msra.mxu0 %v4368_v32 }
 0x16d   :  { %2858 = vmatpush3.msra.mxu1 %v4369_v33  ;;  %2834 = vmatprep.subr.mxu0 %v4370_v35 }
 0x16e   :  { %2859 = vmatprep.subr.mxu1 %v4371_v36  ;;  %2835 = vmatpush3.msra.mxu0 %v4370_v35 }
 0x16f   :  { %2860 = vmatpush3.msra.mxu1 %v4371_v36  ;;  %2836 = vmatprep.subr.mxu0 %v4372_v37 }
 0x170   :  { %2861 = vmatprep.subr.mxu1 %v4373_v38  ;;  %2837 = vmatpush3.msra.mxu0 %v4372_v37 }
 0x171   :  { %2862 = vmatpush3.msra.mxu1 %v4373_v38  ;;  %2838 = vmatprep.subr.mxu0 %v4374_v40 }
 0x172   :  { %2863 = vmatprep.subr.mxu1 %v4375_v43  ;;  %2839 = vmatpush3.msra.mxu0 %v4374_v40  ;;  %v4099_v40 = vld [vmem:[%s4221_s4] ss:$0 sm:$0xff] }
 0x173   :  { %2864 = vmatpush3.msra.mxu1 %v4375_v43  ;;  %2840 = vmatprep.subr.mxu0 %v4376_v45 }
 0x174   :  { %2865 = vmatprep.subr.mxu1 %v4377_v47  ;;  %2841 = vmatpush3.msra.mxu0 %v4376_v45 }
 0x175   :  { %2866 = vmatpush3.msra.mxu1 %v4377_v47  ;;  %2842 = vmatprep.subr.mxu0 %v4378_v48 }
 0x176   :  { %2867 = vmatprep.subr.mxu1 %v4379_v52  ;;  %2843 = vmatpush3.msra.mxu0 %v4378_v48 }
 0x177   :  { %2868 = vmatpush3.msra.mxu1 %v4379_v52  ;;  %2844 = vmatprep.subr.mxu0 %v4380_v54 }
 0x178   :  { %2869 = vmatprep.subr.mxu1 %v4381_v56  ;;  %2845 = vmatpush3.msra.mxu0 %v4380_v54 }
 0x179   :  { %2870 = vmatpush3.msra.mxu1 %v4381_v56  ;;  %2846 = vmatprep.subr.mxu0 %v4382_v57 }
 0x17a   :  { %2871 = vmatprep.subr.mxu1 %v4383_v23  ;;  %2847 = vmatpush3.msra.mxu0 %v4382_v57 }
 0x17b   :  { %2872 = vmatpush3.msra.mxu1 %v4383_v23  ;;  %2848 = vmatprep.subr.mxu0 %v4384_v26 }
 0x17c   :  { %2873 = vmatprep.subr.mxu1 %v4385_v28  ;;  %2849 = vmatpush3.msra.mxu0 %v4384_v26 }
 0x17d   :  { %2874 = vmatpush3.msra.mxu1 %v4385_v28  ;;  %2888 = vmatprep.subr.mxu0 %v3576_v20 }
 0x17e   :  { %2875 = vmatprep.subr.mxu1 %v4386_v4 }
 0x17f   :  { %2876 = vmatpush3.msra.mxu1 %v4386_v4 }
 0x180   :  { %2877 = vmatprep.subr.mxu1 %v4387_v6 }
 0x181   :  { %2878 = vmatpush3.msra.mxu1 %v4387_v6 }
 0x182   :  { %2879 = vmatprep.subr.mxu1 %v4388_v7 }
 0x183   :  { %2880 = vmatpush3.msra.mxu1 %v4388_v7 }
 0x184   :  { %2881 = vmatprep.subr.mxu1 %v4389_v9 }
 0x185   :  { %2882 = vmatpush3.msra.mxu1 %v4389_v9 }
 0x186   :  { %2883 = vmatprep.subr.mxu1 %v4390_v11 }
 0x187   :  { %2884 = vmatpush3.msra.mxu1 %v4390_v11 }
 0x188   :  { %2923 = vmatprep.subr.mxu1 %v3567_v22 }
 0x1c1   :  { %v2617_v19 = vpop.f32.mrf.mxu0 }
 0x1c3   :  { %v675_v29 = vpop.f32.mrf.mxu0 }
 0x1c4   :  { %v2582_v13 = vpop.f32.mrf.mxu1 }
 0x1c5   :  { %v681_v27 = vadd.f32 %v2617_v19, %v2582_v13 }
 0x1c6   :  { %v600_v15 = vpop.f32.mrf.mxu1 }
 0x1c7   :  { %v676_v31 = vadd.f32 %v675_v29, %v600_v15 }
 0x1e3   :  { %v2687_v33 = vpop.f32.mrf.mxu0 }
 0x1e4   :  { %v2652_v24 = vpop.f32.mrf.mxu1 }
 0x1e5   :  { %v779_v32 = vadd.f32 %v2652_v24, %v681_v27  ;;  %v865_v37 = vpop.f32.mrf.mxu0 }
 0x1e6   :  { %v769_v30 = vpop.f32.mrf.mxu1 }
 0x1e7   :  { %v778_v35 = vadd.f32 %v769_v30, %v676_v31  ;;  %v875_v36 = vadd.f32 %v2687_v33, %v779_v32 }
 0x1e9   :  { %v874_v43 = vadd.f32 %v865_v37, %v778_v35 }
 0x1f7   :  { %v2741_v56 = vpop.f32.mrf.mxu0 }
 0x1f9   :  { %v1078_v57 = vpop.f32.mrf.mxu0 }
 0x206   :  { %v2722_v38 = vpop.f32.mrf.mxu1 }
 0x207   :  { %v971_v45 = vadd.f32 %v2722_v38, %v875_v36  ;;  %v2760_v23 = vpop.f32.mrf.mxu0 }
 0x208   :  { %v961_v47 = vpop.f32.mrf.mxu1  ;;  %v1165_v4 = vadd.f32 %v2760_v23, %v2741_v56 }
 0x209   :  { %v980_v48 = vadd.f32 %v4099_v40, %v971_v45  ;;  %v970_v52 = vadd.f32 %v961_v47, %v874_v43  ;;  %v1159_v28 = vpop.f32.mrf.mxu0  ;;  %v4406_v45 = vld [vmem:[#allocation48_spill] sm:$0xff] }
 0x20a   :  { %v1160_v9 = vadd.f32 %v1159_v28, %v1078_v57 }
 0x20b   :  { %984 = vst.msk [vmem:[%s4222_s5 + $0x8] sm:$0xf] %vm983_vm1, %v980_v48  ;;  %v979_v54 = vadd.f32 %v4099_v40, %v970_v52 }
 0x20d   :  { %982 = vst.msk [vmem:[%s4222_s5] sm:$0xff] %vm981_vm2, %v979_v54 }
 0x217   :  { %v2779_v26 = vpop.f32.mrf.mxu1 }
 0x218   :  { %v1260_v11 = vadd.f32 %v2779_v26, %v1165_v4 }
 0x219   :  { %v1250_v6 = vpop.f32.mrf.mxu1 }
 0x21a   :  { %v2798_v7 = vpop.f32.mrf.mxu0  ;;  %v1259_v13 = vadd.f32 %v1250_v6, %v1160_v9 }
 0x21b   :  { %v1353_v19 = vadd.f32 %v2798_v7, %v1260_v11 }
 0x21c   :  { %v1343_v15 = vpop.f32.mrf.mxu0 }
 0x21d   :  { %v1352_v27 = vadd.f32 %v1343_v15, %v1259_v13 }
 0x228   :  { %v2817_v24 = vpop.f32.mrf.mxu1 }
 0x229   :  { %v1446_v29 = vadd.f32 %v2817_v24, %v1353_v19 }
 0x22a   :  { %v1436_v30 = vpop.f32.mrf.mxu1 }
 0x22b   :  { %v1455_v31 = vadd.f32 %v3582_v51, %v1446_v29  ;;  %v1445_v32 = vadd.f32 %v1436_v30, %v1352_v27 }
 0x22d   :  { %1457 = vst [vmem:[#allocation2 + $0x8] sm:$0xff] %v1455_v31  ;;  %v1454_v33 = vadd.f32 %v3582_v51, %v1445_v32  ;;  %v4391_v51 = vld [vmem:[#allocation33_spill] sm:$0xff] }
 0x22f   :  { %1456 = vst [vmem:[#allocation2] sm:$0xff] %v1454_v33  ;;  %2885 = vmatprep.mubr.f32.mxu1 %v1454_v33 }
 0x234   :  { %v1459_v35 = vld [vmem:[#allocation2 + $0x8] sm:$0xf] }
 0x235   :  { %2886 = vmatmul.mubr.f32.vlgmr.msra.gmra.mxu1 %v1459_v35  ;;  %v1477_v38 = vld [vmem:[#allocation2 + $0x9] sm:$0xf] }
 0x236   :  { %v1476_v36 = vld [vmem:[#allocation2 + $0x1] sm:$0xff]  ;;  %2924 = vmatpush3.msra.mxu1 %v3567_v22  ;;  %v4393_v22 = vld [vmem:[#allocation35_spill] sm:$0xff]  ;;  %v1740_v47 = vld [vmem:[#allocation2 + $0xb] sm:$0xf] }
 0x237   :  { %v1739_v37 = vld [vmem:[#allocation2 + $0x3] sm:$0xff]  ;;  %2850 = vmatprep.mubr.f32.mxu0 %v1476_v36  ;;  %2925 = vmatprep.subr.mxu1 %v3589_v55 }
 0x238   :  { %2851 = vmatmul.mubr.f32.vlgmr.msra.gmra.mxu0 %v1477_v38  ;;  %v1644_v43 = vld [vmem:[#allocation2 + $0x2] sm:$0xff]  ;;  %2955 = vmatprep.mubr.f32.mxu1 %v1739_v37  ;;  %v1645_v48 = vld [vmem:[#allocation2 + $0xa] sm:$0xf] }
 0x239   :  { %2889 = vmatpush3.msra.mxu0 %v3576_v20  ;;  %2920 = vmatprep.mubr.f32.mxu0 %v1644_v43  ;;  %v4392_v20 = vld [vmem:[#allocation34_spill] sm:$0xff] }
 0x23a   :  { %2890 = vmatprep.subr.mxu0 %v3595_v41  ;;  %2926 = vmatpush3.msra.mxu1 %v3589_v55  ;;  %v4394_v55 = vld [vmem:[#allocation36_spill] sm:$0xff]  ;;  %v1834_v52 = vld [vmem:[#allocation2 + $0x4] sm:$0xff] }
 0x23b   :  { %2891 = vmatpush3.msra.mxu0 %v3595_v41  ;;  %2927 = vmatprep.subr.mxu1 %v3601_v50  ;;  %v4395_v41 = vld [vmem:[#allocation37_spill] sm:$0xff] }
 0x23c   :  { %2892 = vmatprep.subr.mxu0 %v3607_v59  ;;  %2928 = vmatpush3.msra.mxu1 %v3601_v50  ;;  %v4396_v50 = vld [vmem:[#allocation38_spill] sm:$0xff] }
 0x23d   :  { %2893 = vmatpush3.msra.mxu0 %v3607_v59  ;;  %2929 = vmatprep.subr.mxu1 %v3614_v62  ;;  %v4397_v59 = vld [vmem:[#allocation39_spill] sm:$0xff] }
 0x23e   :  { %2894 = vmatprep.subr.mxu0 %v3621_v3  ;;  %2930 = vmatpush3.msra.mxu1 %v3614_v62  ;;  %v4398_v62 = vld [vmem:[#allocation40_spill] sm:$0xff] }
 0x23f   :  { %2895 = vmatpush3.msra.mxu0 %v3621_v3  ;;  %2931 = vmatprep.subr.mxu1 %v3628_v16  ;;  %v4399_v3 = vld [vmem:[#allocation41_spill] sm:$0xff] }
 0x240   :  { %2896 = vmatprep.subr.mxu0 %v3635_v25  ;;  %2932 = vmatpush3.msra.mxu1 %v3628_v16  ;;  %v4400_v16 = vld [vmem:[#allocation42_spill] sm:$0xff] }
 0x241   :  { %2897 = vmatpush3.msra.mxu0 %v3635_v25  ;;  %2933 = vmatprep.subr.mxu1 %v3642_v34  ;;  %v4401_v25 = vld [vmem:[#allocation43_spill] sm:$0xff] }
 0x242   :  { %2898 = vmatprep.subr.mxu0 %v3649_v42  ;;  %2934 = vmatpush3.msra.mxu1 %v3642_v34  ;;  %v4402_v34 = vld [vmem:[#allocation44_spill] sm:$0xff] }
 0x243   :  { %2899 = vmatpush3.msra.mxu0 %v3649_v42  ;;  %2935 = vmatprep.subr.mxu1 %v3656_v44  ;;  %v4403_v42 = vld [vmem:[#allocation45_spill] sm:$0xff] }
 0x244   :  { %2900 = vmatprep.subr.mxu0 %v3663_v46  ;;  %2936 = vmatpush3.msra.mxu1 %v3656_v44  ;;  %v4404_v44 = vld [vmem:[#allocation46_spill] sm:$0xff] }
 0x245   :  { %2901 = vmatpush3.msra.mxu0 %v3663_v46  ;;  %2937 = vmatprep.subr.mxu1 %v4391_v51  ;;  %v4405_v46 = vld [vmem:[#allocation47_spill] sm:$0xff] }
 0x246   :  { %2902 = vmatprep.subr.mxu0 %v4392_v20  ;;  %2938 = vmatpush3.msra.mxu1 %v4391_v51 }
 0x247   :  { %2903 = vmatpush3.msra.mxu0 %v4392_v20  ;;  %2939 = vmatprep.subr.mxu1 %v4393_v22 }
 0x248   :  { %2904 = vmatprep.subr.mxu0 %v4394_v55  ;;  %2940 = vmatpush3.msra.mxu1 %v4393_v22 }
 0x249   :  { %2905 = vmatpush3.msra.mxu0 %v4394_v55  ;;  %2941 = vmatprep.subr.mxu1 %v4395_v41 }
 0x24a   :  { %2906 = vmatprep.subr.mxu0 %v4396_v50  ;;  %2942 = vmatpush3.msra.mxu1 %v4395_v41 }
 0x24b   :  { %2907 = vmatpush3.msra.mxu0 %v4396_v50  ;;  %2943 = vmatprep.subr.mxu1 %v4397_v59 }
 0x24c   :  { %2908 = vmatprep.subr.mxu0 %v4398_v62  ;;  %2944 = vmatpush3.msra.mxu1 %v4397_v59 }
 0x24d   :  { %2909 = vmatpush3.msra.mxu0 %v4398_v62  ;;  %2945 = vmatprep.subr.mxu1 %v4399_v3 }
 0x24e   :  { %2910 = vmatprep.subr.mxu0 %v4400_v16  ;;  %2946 = vmatpush3.msra.mxu1 %v4399_v3 }
 0x24f   :  { %2911 = vmatpush3.msra.mxu0 %v4400_v16  ;;  %2947 = vmatprep.subr.mxu1 %v4401_v25 }
 0x250   :  { %2912 = vmatprep.subr.mxu0 %v4402_v34  ;;  %2948 = vmatpush3.msra.mxu1 %v4401_v25 }
 0x251   :  { %2913 = vmatpush3.msra.mxu0 %v4402_v34  ;;  %2949 = vmatprep.subr.mxu1 %v4403_v42 }
 0x252   :  { %2914 = vmatprep.subr.mxu0 %v4404_v44  ;;  %2950 = vmatpush3.msra.mxu1 %v4403_v42 }
 0x253   :  { %2915 = vmatpush3.msra.mxu0 %v4404_v44  ;;  %2951 = vmatprep.subr.mxu1 %v4405_v46 }
 0x254   :  { %2916 = vmatprep.subr.mxu0 %v4406_v45  ;;  %2952 = vmatpush3.msra.mxu1 %v4405_v46 }
 0x255   :  { %2917 = vmatpush3.msra.mxu0 %v4406_v45  ;;  %2953 = vmatprep.subr.mxu1 %v3782_v53 }
 0x256   :  { %2918 = vmatprep.subr.mxu0 %v3789_v63  ;;  %2954 = vmatpush3.msra.mxu1 %v3782_v53 }
 0x257   :  { %2919 = vmatpush3.msra.mxu0 %v3789_v63  ;;  %2956 = vmatmul.mubr.f32.vlgmr.msra.gmra.mxu1 %v1740_v47 }
 0x258   :  { %2921 = vmatmul.mubr.f32.vlgmr.msra.gmra.mxu0 %v1645_v48  ;;  %2958 = vmatprep.subr.mxu0 %v3798_v39 }
 0x259   :  { %2959 = vmatpush3.msra.mxu0 %v3798_v39  ;;  %2990 = vmatprep.mubr.f32.mxu0 %v1834_v52 }
 0x25a   :  { %2960 = vmatprep.subr.mxu0 %v3807_v60 }
 0x25b   :  { %2961 = vmatpush3.msra.mxu0 %v3807_v60  ;;  %v1835_v60 = vld [vmem:[#allocation2 + $0xc] sm:$0xf] }
 0x25c   :  { %2962 = vmatprep.subr.mxu0 %v3815_v61 }
 0x25d   :  { %2963 = vmatpush3.msra.mxu0 %v3815_v61 }
 0x25e   :  { %2964 = vmatprep.subr.mxu0 %v3824_v49 }
 0x25f   :  { %2965 = vmatpush3.msra.mxu0 %v3824_v49 }
 0x260   :  { %2966 = vmatprep.subr.mxu0 %v3833_v0 }
 0x261   :  { %2967 = vmatpush3.msra.mxu0 %v3833_v0 }
 0x262   :  { %2968 = vmatprep.subr.mxu0 %v3842_v1 }
 0x263   :  { %2969 = vmatpush3.msra.mxu0 %v3842_v1 }
 0x264   :  { %2970 = vmatprep.subr.mxu0 %v3851_v2 }
 0x265   :  { %2971 = vmatpush3.msra.mxu0 %v3851_v2 }
 0x266   :  { %2972 = vmatprep.subr.mxu0 %v3860_v5 }
 0x267   :  { %2973 = vmatpush3.msra.mxu0 %v3860_v5 }
 0x268   :  { %2974 = vmatprep.subr.mxu0 %v3869_v8 }
 0x269   :  { %2975 = vmatpush3.msra.mxu0 %v3869_v8 }
 0x26a   :  { %2976 = vmatprep.subr.mxu0 %v3884_v58 }
 0x26b   :  { %2977 = vmatpush3.msra.mxu0 %v3884_v58 }
 0x26c   :  { %2978 = vmatprep.subr.mxu0 %v3893_v14 }
 0x26d   :  { %2979 = vmatpush3.msra.mxu0 %v3893_v14 }
 0x26e   :  { %2980 = vmatprep.subr.mxu0 %v3902_v10 }
 0x26f   :  { %2981 = vmatpush3.msra.mxu0 %v3902_v10 }
 0x270   :  { %2982 = vmatprep.subr.mxu0 %v3911_v12 }
 0x271   :  { %2983 = vmatpush3.msra.mxu0 %v3911_v12 }
 0x272   :  { %2984 = vmatprep.subr.mxu0 %v3920_v17 }
 0x273   :  { %2985 = vmatpush3.msra.mxu0 %v3920_v17 }
 0x274   :  { %2986 = vmatprep.subr.mxu0 %v3929_v18 }
 0x275   :  { %2987 = vmatpush3.msra.mxu0 %v3929_v18 }
 0x276   :  { %2988 = vmatprep.subr.mxu0 %v3938_v21 }
 0x277   :  { %2989 = vmatpush3.msra.mxu0 %v3938_v21 }
 0x278   :  { %2991 = vmatmul.mubr.f32.vlgmr.msra.gmra.mxu0 %v1835_v60 }
 0x2f5   :  { %v2887_v39 = vpop.f32.mrf.mxu1 }
 0x2f7   :  { %v1635_v0 = vpop.f32.mrf.mxu1 }
 0x2f8   :  { %v2852_v53 = vpop.f32.mrf.mxu0 }
 0x2f9   :  { %v1641_v49 = vadd.f32 %v2887_v39, %v2852_v53 }
 0x2fa   :  { %v1560_v63 = vpop.f32.mrf.mxu0 }
 0x2fb   :  { %v1636_v2 = vadd.f32 %v1635_v0, %v1560_v63 }
 0x317   :  { %v2957_v8 = vpop.f32.mrf.mxu1 }
 0x318   :  { %v2922_v61 = vpop.f32.mrf.mxu0 }
 0x319   :  { %v1738_v5 = vadd.f32 %v2922_v61, %v1641_v49  ;;  %v1823_v10 = vpop.f32.mrf.mxu1 }
 0x31a   :  { %v1728_v1 = vpop.f32.mrf.mxu0 }
 0x31b   :  { %v1737_v58 = vadd.f32 %v1728_v1, %v1636_v2  ;;  %v1833_v14 = vadd.f32 %v2957_v8, %v1738_v5 }
 0x31d   :  { %v1832_v17 = vadd.f32 %v1823_v10, %v1737_v58 }
 0x338   :  { %v2992_v12 = vpop.f32.mrf.mxu0 }
 0x339   :  { %v1928_v18 = vadd.f32 %v2992_v12, %v1833_v14 }
 0x33a   :  { %v1918_v54 = vpop.f32.mrf.mxu0 }
 0x33b   :  { %v1937_v21 = vadd.f32 %v4099_v40, %v1928_v18  ;;  %v1927_v56 = vadd.f32 %v1918_v54, %v1832_v17 }
 0x33d   :  { %2172 = vst.msk [vmem:[%s4222_s5 + $0x18] sm:$0xf] %vm983_vm1, %v1937_v21  ;;  %v1936_v57 = vadd.f32 %v4099_v40, %v1927_v56 }
 0x33f   :  { %2171 = vst.msk [vmem:[%s4222_s5 + $0x10] sm:$0xff] %vm981_vm2, %v1936_v57 }

</bundles_post_ra>
